<compile_context>
chip_gen: v7x
topology: tpu7x:2x2x1
jax: 0.10.0
libtpu: 0.0.40
codegen_flags: <defaults>
</compile_context>

<pallas_src>
import functools

import jax
import jax.numpy as jnp
from jax.experimental import pallas as pl
from jax.experimental.pallas import tpu as pltpu

_LANE = 128
_VMEM_LIMIT_BYTES = 64 * 1024 * 1024   # raise scoped default (16/32 MiB)
_VMEM_PLAN_BYTES = 40 * 1024 * 1024    # tile-planning budget (fits v7x 64 MiB)


def _round_up(x, m):
    return ((x + m - 1) // m) * m


def _plan_dst_tiling(n, dout):
    """Pick (tm, n_pad): dst tile size and padded node count.

    tm is a multiple of 128 (lane-dense pool / A blocks) and the dst axis gets
    >= 2 tiles so the 'parallel' grid axis shards across both TensorCores on
    v7x.  The double-buffered working set stays under _VMEM_PLAN_BYTES.
    """
    for tm in (512, 256, 128):
        n_pad = _round_up(n, tm)
        if n_pad < 2 * tm:
            continue                      # would leave one TensorCore idle
        need = (2 * tm * n_pad * 2        # A dst tile (bf16, double-buffered)
                + 2 * n_pad * dout * 2    # HW[r]      (bf16, double-buffered)
                + 2 * tm * dout * 2       # self-message tile (bf16)
                + tm * dout * 4           # resident f32 accumulator / output
                + 4 * tm * 16)            # norm / pool tiles (generous)
        if need <= _VMEM_PLAN_BYTES:
            return tm, n_pad
    # Tiny graphs (or nothing fits): smallest lane-aligned tile, >= 2 tiles.
    # TODO(synk): for huge N, also tile the src axis instead of falling here.
    tm = _LANE
    return tm, max(_round_up(n, tm), 2 * tm)


# --------------------------------------------------------------------------
# Kernel 1: per-relation projection (hoisted out of the dst-tile loop).
#   HW_all[r] = h @ W_all[r]      (slot num_rels is the self-loop weight)
# --------------------------------------------------------------------------
def _project_kernel(h_ref, w_ref, hw_ref):
    hw_ref[...] = jnp.dot(
        h_ref[...], w_ref[...], preferred_element_type=jnp.float32
    ).astype(jnp.bfloat16)


def rgcn_project(h_bf16, w_all, tm):
    n_pad, din = h_bf16.shape
    num_w, _, dout = w_all.shape
    assert n_pad % tm == 0
    return pl.pallas_call(
        _project_kernel,
        out_shape=jax.ShapeDtypeStruct((num_w, n_pad, dout), jnp.bfloat16),
        grid=(num_w, n_pad // tm),
        in_specs=[
            pl.BlockSpec((tm, din), lambda r, m: (m, 0)),              # h tile
            pl.BlockSpec((None, din, dout), lambda r, m: (r, 0, 0)),   # W_all[r]
        ],
        out_specs=pl.BlockSpec((None, tm, dout), lambda r, m: (r, m, 0)),
        compiler_params=pltpu.CompilerParams(
            dimension_semantics=("parallel", "parallel"),
            vmem_limit_bytes=_VMEM_LIMIT_BYTES),
    )(h_bf16, w_all)


# --------------------------------------------------------------------------
# Kernel 2: RGCN aggregation + fused mean-pool epilogue.
#   repr = ReLU( norm * sum_r A[r] @ HW[r]  +  HW_self )
#   pooled[m] = pool[:, dst_tile_m] @ repr[dst_tile_m]   (partial; summed in JAX)
# Grid: (dst tiles [parallel], relations [arbitrary / reduction]).
# repr_ref is the accumulator (same output block across the relation axis).
# --------------------------------------------------------------------------
def _rgcn_agg_kernel(a_ref, hw_ref, self_ref, norm_ref, pool_ref,
                     repr_ref, pooled_ref):
    r = pl.program_id(1)

    @pl.when(r == 0)
    def _():
        repr_ref[...] = jnp.zeros_like(repr_ref)

    # single bf16 MXU op per step: A[r, dst_tile, :] @ HW[r]
    repr_ref[...] += jnp.dot(a_ref[...], hw_ref[...],
                             preferred_element_type=jnp.float32)

    @pl.when(r == pl.num_programs(1) - 1)
    def _():
        rep = norm_ref[...] * repr_ref[...] + self_ref[...].astype(jnp.float32)
        rep = jnp.maximum(rep, 0.0)
        repr_ref[...] = rep
        # fused mean-pool partial for this dst tile (mean_nodes)
        pooled_ref[...] = jnp.dot(pool_ref[...], rep,
                                  preferred_element_type=jnp.float32)


def rgcn_aggregate(adj_bf16, hw_all, norm, pool, tm):
    num_rels, n_pad, _ = adj_bf16.shape
    num_w, _, dout = hw_all.shape
    bsz = pool.shape[0]
    assert num_w == num_rels + 1 and n_pad % tm == 0
    n_tiles = n_pad // tm
    self_slot = num_rels
    return pl.pallas_call(
        _rgcn_agg_kernel,
        out_shape=(jax.ShapeDtypeStruct((n_pad, dout), jnp.float32),
                   jax.ShapeDtypeStruct((n_tiles, bsz, dout), jnp.float32)),
        grid=(n_tiles, num_rels),
        in_specs=[
            pl.BlockSpec((None, tm, n_pad), lambda m, r: (r, m, 0)),    # A[r] tile
            pl.BlockSpec((None, n_pad, dout), lambda m, r: (r, 0, 0)),  # HW[r]
            pl.BlockSpec((None, tm, dout),
                         lambda m, r: (self_slot, m, 0)),               # h @ W_self
            pl.BlockSpec((tm, 1), lambda m, r: (m, 0)),                 # dst norm
            pl.BlockSpec((bsz, tm), lambda m, r: (0, m)),               # pool cols
        ],
        out_specs=(pl.BlockSpec((tm, dout), lambda m, r: (m, 0)),
                   pl.BlockSpec((None, bsz, dout), lambda m, r: (m, 0, 0))),
        compiler_params=pltpu.CompilerParams(
            dimension_semantics=("parallel", "arbitrary"),
            vmem_limit_bytes=_VMEM_LIMIT_BYTES),
    )(adj_bf16, hw_all, hw_all, norm, pool)


# --------------------------------------------------------------------------
# One-time prep (hoisted out of the jitted forward): padding + bf16 casts.
# Padded node rows contribute exactly zero (h rows zero -> HW rows zero, A
# rows/cols zero, pool columns zero), so results are unchanged.
# --------------------------------------------------------------------------
def prepare_inputs(h0, adj, norm, pool, w_rel, w_self):
    n, din = h0.shape
    num_rels, _, dout = w_rel.shape
    din_p = _round_up(max(din, _LANE), _LANE)
    dout_p = _round_up(max(dout, _LANE), _LANE)
    tm, n_pad = _plan_dst_tiling(n, dout_p)

    h_p = jnp.pad(h0, ((0, n_pad - n), (0, din_p - din))).astype(jnp.bfloat16)
    adj_p = jnp.pad(adj, ((0, 0), (0, n_pad - n), (0, n_pad - n))
                    ).astype(jnp.bfloat16)
    norm_p = jnp.pad(norm, ((0, n_pad - n), (0, 0)), constant_values=1.0)
    pool_p = jnp.pad(pool, ((0, 0), (0, n_pad - n)))
    w_all = jnp.concatenate([w_rel, w_self[None]], axis=0)      # self-loop slot
    w_all = jnp.pad(w_all, ((0, 0), (0, din_p - din), (0, dout_p - dout))
                    ).astype(jnp.bfloat16)
    return h_p, adj_p, norm_p, pool_p, w_all, tm


# --------------------------------------------------------------------------
# End-to-end forward (hot path in Pallas, tiny readout head in plain JAX).
# --------------------------------------------------------------------------
def graph_classifier_forward(h_p, adj_p, norm_p, pool_p, w_all,
                             head_idx, tail_idx, rel_labels, rel_emb_w,
                             fc_w, fc_b, *, emb_dim, tm):
    hw_all = rgcn_project(h_p, w_all, tm)
    node_repr, pooled = rgcn_aggregate(adj_p, hw_all, norm_p, pool_p, tm)
    # readout: mean_nodes (already pooled per tile), head/tail gathers, fc.
    g_out = jnp.sum(pooled, axis=0)[:, :emb_dim]
    head = node_repr[head_idx][:, :emb_dim]
    tail = node_repr[tail_idx][:, :emb_dim]
    rel = rel_emb_w[rel_labels]
    g_rep = jnp.concatenate([g_out, head, tail, rel], axis=1)
    return g_rep @ fc_w + fc_b


if __name__ == "__main__":
    # small, forward-consistent shapes
    B = 2            # graphs in the batch
    n_per = 8        # nodes per graph
    N = B * n_per    # total nodes in the batched graph
    num_rels = 4
    inp_dim = 32
    emb_dim = 32
    rel_emb_dim = 32
    # no_jk=True, add_ht_emb=True -> fc in-dim = 3*1*emb_dim + rel_emb_dim
    fc_in = 3 * emb_dim + rel_emb_dim

    key = jax.random.PRNGKey(0)
    k_h, k_a, k_rel, k_w, k_ws, k_fc = jax.random.split(key, 6)

    # node input features
    h0 = jax.random.normal(k_h, (N, inp_dim), dtype=jnp.float32)

    # dense per-relation adjacency, block-diagonal per graph (A[r, dst, src])
    graph_id = jnp.repeat(jnp.arange(B), n_per)                     # (N,)
    same_graph = graph_id[:, None] == graph_id[None, :]             # (N, N)
    rand_edges = jax.random.uniform(k_a, (num_rels, N, N)) < 0.3
    adj = (rand_edges & same_graph[None]).astype(jnp.float32)

    # in-degree norm: in_deg[in_deg == 0] = 1 ; norm = 1 / in_deg
    in_deg = jnp.sum(adj, axis=(0, 2))
    in_deg = jnp.where(in_deg == 0, 1.0, in_deg)
    norm = (1.0 / in_deg).reshape(N, 1).astype(jnp.float32)

    # node 'id' field: node 0 of each graph is head (id=1), node 1 tail (id=2)
    head_idx = (jnp.arange(B) * n_per + 0).astype(jnp.int32)
    tail_idx = (jnp.arange(B) * n_per + 1).astype(jnp.int32)
    pool = (graph_id[None, :] == jnp.arange(B)[:, None]).astype(jnp.float32) / n_per

    # relation labels + embedding table (torch.nn.init.normal_)
    rel_labels = jnp.array([1, 3], dtype=jnp.int32)
    rel_emb_w = jax.random.normal(k_rel, (num_rels, rel_emb_dim), dtype=jnp.float32)

    # RGCN parameters
    w_rel = jax.random.normal(k_w, (num_rels, inp_dim, emb_dim),
                              dtype=jnp.float32) * (1.0 / jnp.sqrt(inp_dim))
    w_self = jax.random.normal(k_ws, (inp_dim, emb_dim),
                               dtype=jnp.float32) * (1.0 / jnp.sqrt(inp_dim))

    # final linear layer
    fc_w = jax.random.normal(k_fc, (fc_in, 1), dtype=jnp.float32) * 0.05
    fc_b = jnp.zeros((1,), dtype=jnp.float32)

    # ---- one-time prep (padding + bf16 casts), hoisted out of the forward --
    h_p, adj_p, norm_p, pool_p, w_all, tm = prepare_inputs(
        h0, adj, norm, pool, w_rel, w_self)

    forward = jax.jit(functools.partial(
        graph_classifier_forward, emb_dim=emb_dim, tm=tm))
    out = forward(h_p, adj_p, norm_p, pool_p, w_all, head_idx, tail_idx,
                  rel_labels, rel_emb_w, fc_w, fc_b)
    out = jax.block_until_ready(out)

    # ---- pure-JAX reference (f32 throughout) ------------------------------
    hw = jnp.einsum('ni,rie->rne', h0, w_rel)
    agg = jnp.einsum('rds,rse->de', adj, hw)
    ref_repr = jnp.maximum(norm * agg + h0 @ w_self, 0.0)
    g_rep = jnp.concatenate([pool @ ref_repr,
                             ref_repr[head_idx],
                             ref_repr[tail_idx],
                             rel_emb_w[rel_labels]], axis=1)
    ref_out = g_rep @ fc_w + fc_b[0]

    assert out.shape == (B, 1)
    # Note: h / HW / self-message are carried in bf16 (f32 MXU accumulation),
    # so a small numeric deviation from the pure-f32 reference is expected.
    assert jnp.allclose(out, ref_out, rtol=2e-2, atol=2e-2)
    print("KERNEL_OK")
</pallas_src>

<mosaic_0001>
module attributes {stable_mosaic.version = 11 : i64} {
  func.func @_rgcn_agg_kernel(%arg0: i32, %arg1: i32, %arg2: memref<1x128x256xbf16, #tpu.memory_space<vmem>>, %arg3: memref<1x256x128xbf16, #tpu.memory_space<vmem>>, %arg4: memref<1x128x128xbf16, #tpu.memory_space<vmem>>, %arg5: memref<128x1xf32, #tpu.memory_space<vmem>>, %arg6: memref<2x128xf32, #tpu.memory_space<vmem>>, %arg7: memref<128x128xf32, #tpu.memory_space<vmem>>, %arg8: memref<1x2x128xf32, #tpu.memory_space<vmem>>) attributes {dimension_semantics = [#tpu.dimension_semantics<parallel>, #tpu.dimension_semantics<arbitrary>], iteration_bounds = array<i64: 2, 4>, scalar_prefetch = 0 : i64, scratch_operands = 0 : i64, tpu.core_type = #tpu.core_type<tc>, window_params = [{transform_indices = @transform_0, window_bounds = array<i64: 1, 128, 256>}, {transform_indices = @transform_1, window_bounds = array<i64: 1, 256, 128>}, {transform_indices = @transform_2, window_bounds = array<i64: 1, 128, 128>}, {transform_indices = @transform_3, window_bounds = array<i64: 128, 1>}, {transform_indices = @transform_4, window_bounds = array<i64: 2, 128>}, {transform_indices = @transform_5, window_bounds = array<i64: 128, 128>}, {transform_indices = @transform_6, window_bounds = array<i64: 1, 2, 128>}]} {
    %c0_i32 = arith.constant 0 : i32
    %0 = arith.cmpi eq, %arg1, %c0_i32 : i32
    %1 = arith.extui %0 : i1 to i32
    %c0_i32_0 = arith.constant 0 : i32
    %2 = arith.cmpi ne, %1, %c0_i32_0 : i32
    scf.if %2 {
      %cst_11 = arith.constant 0.000000e+00 : f32
      %14 = vector.broadcast %cst_11 : f32 to vector<128x128xf32>
      %c0_12 = arith.constant 0 : index
      %c0_13 = arith.constant 0 : index
      %15 = vector.load %arg7[%c0_12, %c0_13] : memref<128x128xf32, #tpu.memory_space<vmem>>, vector<128x128xf32>
      tpu.vector_store %arg7[%c0_12, %c0_13], %14 {strides = array<i32>} : memref<128x128xf32, #tpu.memory_space<vmem>>, vector<128x128xf32>,
    } else {
    }
    %c0 = arith.constant 0 : index
    %c0_1 = arith.constant 0 : index
    %3 = vector.load %arg7[%c0, %c0_1] : memref<128x128xf32, #tpu.memory_space<vmem>>, vector<128x128xf32>
    %c0_2 = arith.constant 0 : index
    %c0_3 = arith.constant 0 : index
    %c0_4 = arith.constant 0 : index
    %4 = vector.load %arg2[%c0_2, %c0_3, %c0_4] : memref<1x128x256xbf16, #tpu.memory_space<vmem>>, vector<1x128x256xbf16>
    %5 = vector.shape_cast %4 : vector<1x128x256xbf16> to vector<128x256xbf16>
    %c0_5 = arith.constant 0 : index
    %c0_6 = arith.constant 0 : index
    %c0_7 = arith.constant 0 : index
    %6 = vector.load %arg3[%c0_5, %c0_6, %c0_7] : memref<1x256x128xbf16, #tpu.memory_space<vmem>>, vector<1x256x128xbf16>
    %7 = vector.shape_cast %6 : vector<1x256x128xbf16> to vector<256x128xbf16>
    %cst = arith.constant dense<0.000000e+00> : vector<128x128xf32>
    %8 = tpu.matmul %5, %7, %cst {dimension_numbers = #tpu.dot_dimension_numbers<[1], [0], [0], [1], [0, 0, 1, 1], [], []>} : vector<128x256xbf16>, vector<256x128xbf16>, vector<128x128xf32> -> vector<128x128xf32>
    %9 = arith.addf %3, %8 : vector<128x128xf32>
    %c0_8 = arith.constant 0 : index
    %c0_9 = arith.constant 0 : index
    %10 = vector.load %arg7[%c0_8, %c0_9] : memref<128x128xf32, #tpu.memory_space<vmem>>, vector<128x128xf32>
    tpu.vector_store %arg7[%c0_8, %c0_9], %9 {strides = array<i32>} : memref<128x128xf32, #tpu.memory_space<vmem>>, vector<128x128xf32>,
    %c3_i32 = arith.constant 3 : i32
    %11 = arith.cmpi eq, %arg1, %c3_i32 : i32
    %12 = arith.extui %11 : i1 to i32
    %c0_i32_10 = arith.constant 0 : i32
    %13 = arith.cmpi ne, %12, %c0_i32_10 : i32
    scf.if %13 {
      %c0_11 = arith.constant 0 : index
      %c0_12 = arith.constant 0 : index
      %14 = vector.load %arg5[%c0_11, %c0_12] : memref<128x1xf32, #tpu.memory_space<vmem>>, vector<128x1xf32>
      %c0_13 = arith.constant 0 : index
      %c0_14 = arith.constant 0 : index
      %15 = vector.load %arg7[%c0_13, %c0_14] : memref<128x128xf32, #tpu.memory_space<vmem>>, vector<128x128xf32>
      %16 = vector.broadcast %14 : vector<128x1xf32> to vector<128x128xf32>
      %17 = arith.mulf %16, %15 : vector<128x128xf32>
      %c0_15 = arith.constant 0 : index
      %c0_16 = arith.constant 0 : index
      %c0_17 = arith.constant 0 : index
      %18 = vector.load %arg4[%c0_15, %c0_16, %c0_17] : memref<1x128x128xbf16, #tpu.memory_space<vmem>>, vector<1x128x128xbf16>
      %19 = vector.shape_cast %18 : vector<1x128x128xbf16> to vector<128x128xbf16>
      %20 = arith.extf %19 : vector<128x128xbf16> to vector<128x128xf32>
      %21 = arith.addf %17, %20 : vector<128x128xf32>
      %cst_18 = arith.constant 0.000000e+00 : f32
      %22 = vector.broadcast %cst_18 : f32 to vector<128x128xf32>
      %23 = arith.maximumf %21, %22 : vector<128x128xf32>
      %c0_19 = arith.constant 0 : index
      %c0_20 = arith.constant 0 : index
      %24 = vector.load %arg7[%c0_19, %c0_20] : memref<128x128xf32, #tpu.memory_space<vmem>>, vector<128x128xf32>
      tpu.vector_store %arg7[%c0_19, %c0_20], %23 {strides = array<i32>} : memref<128x128xf32, #tpu.memory_space<vmem>>, vector<128x128xf32>,
      %c0_21 = arith.constant 0 : index
      %c0_22 = arith.constant 0 : index
      %25 = vector.load %arg6[%c0_21, %c0_22] : memref<2x128xf32, #tpu.memory_space<vmem>>, vector<2x128xf32>
      %cst_23 = arith.constant dense<0.000000e+00> : vector<2x128xf32>
      %26 = tpu.matmul %25, %23, %cst_23 {dimension_numbers = #tpu.dot_dimension_numbers<[1], [0], [0], [1], [0, 0, 1, 1], [], []>} : vector<2x128xf32>, vector<128x128xf32>, vector<2x128xf32> -> vector<2x128xf32>
      %c0_24 = arith.constant 0 : index
      %c0_25 = arith.constant 0 : index
      %c0_26 = arith.constant 0 : index
      %27 = vector.load %arg8[%c0_24, %c0_25, %c0_26] : memref<1x2x128xf32, #tpu.memory_space<vmem>>, vector<1x2x128xf32>
      %28 = vector.shape_cast %27 : vector<1x2x128xf32> to vector<2x128xf32>
      %29 = vector.shape_cast %26 : vector<2x128xf32> to vector<1x2x128xf32>
      tpu.vector_store %arg8[%c0_24, %c0_25, %c0_26], %29 {strides = array<i32>} : memref<1x2x128xf32, #tpu.memory_space<vmem>>, vector<1x2x128xf32>,
    } else {
    }
    return
  }
  func.func @transform_0(%arg0: i32, %arg1: i32) -> (i32, i32, i32) {
    %c0_i32 = arith.constant 0 : i32
    %c0_i32_0 = arith.constant 0 : i32
    return %arg1, %arg0, %c0_i32 : i32, i32, i32
  }
  func.func @transform_1(%arg0: i32, %arg1: i32) -> (i32, i32, i32) {
    %c0_i32 = arith.constant 0 : i32
    %c0_i32_0 = arith.constant 0 : i32
    %c0_i32_1 = arith.constant 0 : i32
    return %arg1, %c0_i32, %c0_i32_0 : i32, i32, i32
  }
  func.func @transform_2(%arg0: i32, %arg1: i32) -> (i32, i32, i32) {
    %c4_i32 = arith.constant 4 : i32
    %c0_i32 = arith.constant 0 : i32
    %c0_i32_0 = arith.constant 0 : i32
    return %c4_i32, %arg0, %c0_i32 : i32, i32, i32
  }
  func.func @transform_3(%arg0: i32, %arg1: i32) -> (i32, i32) {
    %c0_i32 = arith.constant 0 : i32
    %c0_i32_0 = arith.constant 0 : i32
    return %arg0, %c0_i32 : i32, i32
  }
  func.func @transform_4(%arg0: i32, %arg1: i32) -> (i32, i32) {
    %c0_i32 = arith.constant 0 : i32
    %c0_i32_0 = arith.constant 0 : i32
    return %c0_i32, %arg0 : i32, i32
  }
  func.func @transform_5(%arg0: i32, %arg1: i32) -> (i32, i32) {
    %c0_i32 = arith.constant 0 : i32
    %c0_i32_0 = arith.constant 0 : i32
    return %arg0, %c0_i32 : i32, i32
  }
  func.func @transform_6(%arg0: i32, %arg1: i32) -> (i32, i32, i32) {
    %c0_i32 = arith.constant 0 : i32
    %c0_i32_0 = arith.constant 0 : i32
    %c0_i32_1 = arith.constant 0 : i32
    return %arg0, %c0_i32, %c0_i32_0 : i32, i32, i32
  }
}

module attributes {stable_mosaic.version = 11 : i64} {
  func.func @_project_kernel(%arg0: i32, %arg1: i32, %arg2: memref<128x128xbf16, #tpu.memory_space<vmem>>, %arg3: memref<1x128x128xbf16, #tpu.memory_space<vmem>>, %arg4: memref<1x128x128xbf16, #tpu.memory_space<vmem>>) attributes {dimension_semantics = [#tpu.dimension_semantics<parallel>, #tpu.dimension_semantics<parallel>], iteration_bounds = array<i64: 5, 2>, scalar_prefetch = 0 : i64, scratch_operands = 0 : i64, tpu.core_type = #tpu.core_type<tc>, window_params = [{transform_indices = @transform_0, window_bounds = array<i64: 128, 128>}, {transform_indices = @transform_1, window_bounds = array<i64: 1, 128, 128>}, {transform_indices = @transform_2, window_bounds = array<i64: 1, 128, 128>}]} {
    %c0 = arith.constant 0 : index
    %c0_0 = arith.constant 0 : index
    %0 = vector.load %arg2[%c0, %c0_0] : memref<128x128xbf16, #tpu.memory_space<vmem>>, vector<128x128xbf16>
    %c0_1 = arith.constant 0 : index
    %c0_2 = arith.constant 0 : index
    %c0_3 = arith.constant 0 : index
    %1 = vector.load %arg3[%c0_1, %c0_2, %c0_3] : memref<1x128x128xbf16, #tpu.memory_space<vmem>>, vector<1x128x128xbf16>
    %2 = vector.shape_cast %1 : vector<1x128x128xbf16> to vector<128x128xbf16>
    %cst = arith.constant dense<0.000000e+00> : vector<128x128xf32>
    %3 = tpu.matmul %0, %2, %cst {dimension_numbers = #tpu.dot_dimension_numbers<[1], [0], [0], [1], [0, 0, 1, 1], [], []>} : vector<128x128xbf16>, vector<128x128xbf16>, vector<128x128xf32> -> vector<128x128xf32>
    %4 = arith.truncf %3 : vector<128x128xf32> to vector<128x128xbf16>
    %c0_4 = arith.constant 0 : index
    %c0_5 = arith.constant 0 : index
    %c0_6 = arith.constant 0 : index
    %5 = vector.load %arg4[%c0_4, %c0_5, %c0_6] : memref<1x128x128xbf16, #tpu.memory_space<vmem>>, vector<1x128x128xbf16>
    %6 = vector.shape_cast %5 : vector<1x128x128xbf16> to vector<128x128xbf16>
    %7 = vector.shape_cast %4 : vector<128x128xbf16> to vector<1x128x128xbf16>
    tpu.vector_store %arg4[%c0_4, %c0_5, %c0_6], %7 {strides = array<i32>} : memref<1x128x128xbf16, #tpu.memory_space<vmem>>, vector<1x128x128xbf16>,
    return
  }
  func.func @transform_0(%arg0: i32, %arg1: i32) -> (i32, i32) {
    %c0_i32 = arith.constant 0 : i32
    %c0_i32_0 = arith.constant 0 : i32
    return %arg1, %c0_i32 : i32, i32
  }
  func.func @transform_1(%arg0: i32, %arg1: i32) -> (i32, i32, i32) {
    %c0_i32 = arith.constant 0 : i32
    %c0_i32_0 = arith.constant 0 : i32
    %c0_i32_1 = arith.constant 0 : i32
    return %arg0, %c0_i32, %c0_i32_0 : i32, i32, i32
  }
  func.func @transform_2(%arg0: i32, %arg1: i32) -> (i32, i32, i32) {
    %c0_i32 = arith.constant 0 : i32
    %c0_i32_0 = arith.constant 0 : i32
    return %arg0, %arg1, %c0_i32 : i32, i32, i32
  }
}

</mosaic_0001>

<bundles_post_ra>
// kernel: graph_classifier_forward.2
= control target key start
LH: loop header
LB: loop body
LE: loop exit
PB: predicated region body
PF: predicated region fallthrough
CT: control target
= control target key end

     0   :  { %s1597_s0 = inlined_call_operand.hbm [shape: bf16[256,128], index: 0, kind: input, shape index: {}]   ;;  %s1598_s1 = inlined_call_operand.hbm [shape: bf16[5,128,128], index: 1, kind: input, shape index: {}]   ;;  %s1599_s2 = inlined_call_operand.hbm [shape: bf16[5,256,128], index: 2, kind: output, shape index: {}]  }
   0x1   :  { %1613 = sst [smem:[#allocation15_spill]] %s1597_s0 }
   0x2   :  { %7 = vsyncpa [#allocation3], 0 }
   0x3   :  { %9 = vsyncpa [#allocation3 + $0x1], 0 }
   0x4   :  { %10 = vsyncpa [#allocation6], 0 }
   0x5   :  { %12 = vsyncpa [#allocation6 + $0x1], 0 }
   0x6   :  { %13 = vsyncpa [#allocation4], 0 }
   0x7   :  { %15 = vsyncpa [#allocation4 + $0x1], 0  ;;  %s1216_s9 = smov 0   ;;  %s1218_s10 = smov 0  }
   0x8   :  { %s1220_s11 = smov 0   ;;  %s1222_s12 = smov 0  }
   0x9   :  { %s1224_s13 = smov 0   ;;  %s1226_s14 = smov 0  }
   0xa   :  { %s1228_s15 = smov 0   ;;  %s1230_s16 = smov 0  }
   0xb   :  { %s1232_s17 = smov 0   ;;  %s1234_s18 = smov 0  }
   0xc   :  { %s1236_s19 = smov 0   ;;  %s1238_s20 = smov 0  }
   0xd   :  { %s1240_s21 = smov 0   ;;  %s1242_s22 = smov 0  }
   0xe LB: > { %1614 = sst [smem:[#allocation11_spill]] %s1184_s20  ;;  %s30_s23 = sadd.s32 1, %s1184_s20  ;;  %s1192_s22 = sphi %s1242_s22, %s21_s22   ;;  %s1188_s21 = sphi %s1240_s21, %s1655_s21   ;;  %s1184_s20 = sphi %s1238_s20, %s1643_s20   ;;  %s1180_s19 = sphi %s1236_s19, %s1642_s19   ;;  %s1176_s18 = sphi %s1234_s18, %s1641_s18   ;;  %s1172_s17 = sphi %s1232_s17, %s1654_s17   ;;  %s1168_s16 = sphi %s1230_s16, %s1653_s16   ;;  %s1164_s15 = sphi %s1228_s15, %s1652_s15   ;;  %s1160_s14 = sphi %s1226_s14, %s1651_s14   ;;  %s1156_s13 = sphi %s1224_s13, %s1650_s13   ;;  %s1152_s12 = sphi %s1222_s12, %s1649_s12   ;;  %s1148_s11 = sphi %s1220_s11, %s1648_s11   ;;  %s1144_s10 = sphi %s1218_s10, %s1647_s10   ;;  %s1140_s9 = sphi %s1216_s9, %s1646_s9  }
   0xf   : > { %1615 = sst [smem:[#allocation12_spill]] %s1188_s21  ;;  %s1600_s24 = sadd.s32 4294967295, %s1192_s22  }
  0x10   : > { %p1286_p0 = scmp.ge.s32.totalorder %s30_s23, 2  ;;  %p47_p1 = scmp.ne.s32.totalorder %s1172_s17, %s1168_s16 }
  0x11   : > { %p1604_p2 = scmp.eq.s32.totalorder %s1192_s22, 0  ;;  %s40_s26 = sadd.s32 1, %s1172_s17 }
  0x12   : > { %s1657_s23 = smov (%p1286_p0, %s30_s23), 0  ;;  %p53_p3 = scmp.ne.s32.totalorder %s1168_s16, %s1164_s15 }
  0x13   : > { %1617 = sst [smem:[#allocation13_spill]] %s1657_s23  ;;  %s1301_s27 = ssub.s32 %s1184_s20, %s1657_s23 }
  0x14   : > { %p1305_p4 = scmp.eq.s32.totalorder %s1600_s24, 0  ;;  %p38_p5 = scmp.eq.s32.totalorder %s1301_s27, 0 }
  0x15   : > { %p49_p6 = por %p1604_p2, %p47_p1  ;;  %p1603_p8 = scmp.lt.s32.totalorder %s1192_s22, 10 }
  0x16   : > { %s1618_s28 = scalar_select %p1305_p4, 1, 0 }
  0x17   : > { %p1314_p7 = por %p1305_p4, %p53_p3  ;;  %s131_s3 = sand.u32 1, %s1172_s17  }
  0x18   : > { %s1319_s30 = scalar_select %p38_p5, %s1172_s17, %s40_s26  }
  0x19   : > { %s1619_s29 = scalar_select %p1314_p7, 1, 0 }
  0x1a   : > { %s654_s4 = sshll.u32 %s131_s3, 6  ;;  %s702_s5 = sshll.u32 %s1184_s20, 10 }
  0x1b   : > { %s1620_s0 = sld [smem:[#allocation15_spill]]  ;;  %s135_s15 = scalar_lea.vmem [#allocation2], %s654_s4 }
  0x1c   : > { %s142_s24 = sshll.u32 %s135_s15, 4  ;;  %p1333_p9 = pnand %p1603_p8, %p49_p6  ;;  %s1329_s24 = int_to_ptr.vmem [resolvable:$true] %s142_s24 }
  0x1d   : > { %s1338_s23 = scalar_lea.sflag [#allocation3], %s131_s3 }
  0x1e   : > { %p984_p12 = pneg %p1333_p9 }
  0x21   : > { %s1327_s8 = scalar_lea.hbm %s1620_s0, %s702_s5  ;;  %s987_s7 = scalar_lea.hbm %s1620_s0, 2048 }
  0x22   : > { %s982_s5 = scalar_lea.hbm %s1327_s8, 1024  ;;  %p988_p3 = scmp.lt.u32.totalorder %s1327_s8, %s1620_s0 }
  0x23   : > { %p983_p11 = scmp.ne.s32.totalorder %s1327_s8, %s982_s5  ;;  %p989_p5 = scmp.lt.u32.totalorder %s987_s7, %s982_s5 }
  0x24   : > { %p991_p8 = scmp.lt.u32.totalorder %s982_s5, %s1327_s8 }
  0x25   : > { %p985_p13 = pnand %p984_p12, %p983_p11  ;;  %p990_p6 = por %p989_p5, %p988_p3 }
  0x27   : > { %p986_p1 = pneg %p985_p13  ;;  %p992_p2 = por %p991_p8, %p990_p6 }
  0x29   : > { %p993_p10 = pnand %p992_p2, %p986_p1 }
  0x2b   : > { %996 = shalt.err (!%p993_p10)
}
  0x2c   : > { %s997_s3 = scalar_lea.vmem %s1329_s24, 1024  ;;  %s1194_s4 = smov [#allocation2]  }
  0x2d   : > { %p998_p11 = scmp.ne.s32.totalorder %s1329_s24, %s997_s3  ;;  %s1002_s6 = sshll.u32 %s1194_s4, 4  ;;  %s1003_s6 = int_to_ptr.vmem [resolvable:$false] %s1002_s6 }
  0x2e   : > { %s1004_s20 = scalar_lea.vmem %s1003_s6, 2048  ;;  %p1005_p4 = scmp.lt.s32.totalorder %s1329_s24, %s1003_s6 }
  0x2f   : > { %p1000_p13 = pnand %p998_p11, %p984_p12  ;;  %p1006_p3 = scmp.lt.s32.totalorder %s1004_s20, %s997_s3 }
  0x31   : > { %p1001_p7 = pneg %p1000_p13  ;;  %p1007_p5 = por %p1006_p3, %p1005_p4 }
  0x33   : > { %p1008_p8 = pnand %p1007_p5, %p1001_p7 }
  0x35   : > { %1011 = shalt.err (!%p1008_p8)
}
  0x36   : > { %s1607_s5 = smov 64   ;;  %s1608_s7 = smov 4  }
  0x37   : > { %840 = dma.hbm_to_vmem [thread:$0]  (!%p1333_p9), %s1327_s8, 1024, %s1329_s24, %s1338_s23, %s1607_s5, %s1607_s5, %s1608_s7  }
  0x38   : > { %s1622_s15 = sadd.s32 4294967295, %s1192_s22   ;;  %p171_p4 = scmp.lt.s32.totalorder %s1192_s22, 11 }
  0x39   : > { %p1371_p2 = scmp.eq.s32.totalorder %s1622_s15, 9  ;;  %p1624_p7 = scmp.ge.s32.totalorder %s1192_s22, 1 }
  0x3a   : > { %s33_s26 = sadd.s32 1, %s1188_s21  ;;  %s651_s23 = sadd.s32 4294967294, %s1192_s22  }
  0x3b   : > { %p1378_p10 = pnand %p1624_p7, %p171_p4  ;;  %s1659_s26 = smov (!%p1286_p0, %s33_s26), %s1188_s21 }
  0x3c   : > { %s66_s24 = sadd.s32 1, %s1160_s14  ;;  %p35_p9 = scmp.ge.s32.totalorder %s1659_s26, 5 }
  0x3d   : > { %p79_p12 = scmp.ne.s32.totalorder %s1156_s13, %s1152_s12  ;;  %p73_p1 = scmp.ne.s32.totalorder %s1160_s14, %s1156_s13 }
  0x3e   : > { %s94_s8 = sadd.s32 1, %s1148_s11  ;;  %s1661_s26 = smov (%p35_p9, %s1659_s26), 0 }
  0x3f   : > { %1626 = sst [smem:[#allocation14_spill]] %s1661_s26  ;;  %p1627_p6 = scmp.ne.s32.totalorder %s1618_s28, 0 }
  0x40   : > { %p104_p0 = scmp.ne.s32.totalorder %s1148_s11, %s1144_s10  ;;  %s63_s6 = ssub.s32 %s1188_s21, %s1661_s26 }
  0x41   : > { %p1397_p11 = por %p79_p12, %p1627_p6  ;;  %p110_p13 = scmp.ne.s32.totalorder %s1144_s10, %s1140_s9 }
  0x42   : > { %p64_p3 = scmp.eq.s32.totalorder %s63_s6, 0  ;;  %s91_s12 = sor.u32 %s63_s6, %s1301_s27 }
  0x43   : > { %s1628_s25 = scalar_select %p1397_p11, 1, 0 }
  0x44   : > { %p92_p5 = scmp.eq.s32.totalorder %s91_s12, 0  ;;  %p1410_p8 = por %p1371_p2, %p104_p0 }
  0x45   : > { %s1415_s15 = scalar_select %p64_p3, %s1160_s14, %s66_s24  }
  0x46   : > { %s1629_s20 = scalar_select %p1410_p8, 1, 0 }
  0x47   : > { %s1418_s28 = scalar_select %p92_p5, %s1148_s11, %s94_s8  }
  0x48   : > { %p111_p4 = scmp.eq.s32.totalorder %s651_s23, 9  ;;  %s152_s5 = sand.u32 1, %s1160_s14  }
  0x49   : > { %p1630_p7 = scmp.eq.s32.totalorder %s1192_s22, 0  ;;  %s657_s7 = sshll.u32 %s152_s5, 6 }
  0x4a   : > { %p1426_p12 = por %p111_p4, %p110_p13  ;;  %s703_s27 = sshll.u32 %s1188_s21, 10 }
  0x4b   : > { %p75_p9 = por %p73_p1, %p1630_p7  ;;  %s156_s3 = scalar_lea.vmem [#allocation5], %s657_s7 }
  0x4c   : > { %s1631_s0 = scalar_select %p1426_p12, 1, 0 }
  0x4d   : > { %s163_s6 = sshll.u32 %s156_s3, 4  ;;  %s1434_s24 = scalar_lea.hbm %s1598_s1, %s703_s27  ;;  %s1436_s6 = int_to_ptr.vmem [resolvable:$true] %s163_s6 }
  0x4e   : > { %p1632_p2 = scmp.lt.s32.totalorder %s1192_s22, 10  ;;  %s1444_s7 = scalar_lea.sflag [#allocation6], %s152_s5 }
  0x4f   : > { %s1012_s8 = scalar_lea.hbm %s1434_s24, 1024  ;;  %s1017_s3 = scalar_lea.hbm %s1598_s1, 5120 }
  0x50   : > { %p1440_p1 = pnand %p1632_p2, %p75_p9  ;;  %p1013_p6 = scmp.ne.s32.totalorder %s1434_s24, %s1012_s8 }
  0x51   : > { %p1018_p5 = scmp.lt.u32.totalorder %s1434_s24, %s1598_s1  ;;  %p1019_p4 = scmp.lt.u32.totalorder %s1017_s3, %s1012_s8 }
  0x52   : > { %p1014_p0 = pneg %p1440_p1  ;;  %p1021_p9 = scmp.lt.u32.totalorder %s1012_s8, %s1434_s24 }
  0x53   : > { %p1020_p7 = por %p1019_p4, %p1018_p5 }
  0x54   : > { %p1015_p13 = pnand %p1014_p0, %p1013_p6 }
  0x55   : > { %p1022_p2 = por %p1021_p9, %p1020_p7 }
  0x56   : > { %p1016_p3 = pneg %p1015_p13 }
  0x58   : > { %p1023_p12 = pnand %p1022_p2, %p1016_p3 }
  0x5a   : > { %1026 = shalt.err (!%p1023_p12)
}
  0x5b   : > { %s1027_s5 = scalar_lea.vmem %s1436_s6, 1024  ;;  %s1197_s26 = smov [#allocation5]  }
  0x5c   : > { %p1028_p6 = scmp.ne.s32.totalorder %s1436_s6, %s1027_s5  ;;  %s1032_s27 = sshll.u32 %s1197_s26, 4  ;;  %s1033_s27 = int_to_ptr.vmem [resolvable:$false] %s1032_s27 }
  0x5d   : > { %s1034_s21 = scalar_lea.vmem %s1033_s27, 2048  ;;  %p1035_p11 = scmp.lt.s32.totalorder %s1436_s6, %s1033_s27 }
  0x5e   : > { %p1030_p13 = pnand %p1028_p6, %p1014_p0  ;;  %p1036_p5 = scmp.lt.s32.totalorder %s1034_s21, %s1027_s5 }
  0x60   : > { %p1031_p8 = pneg %p1030_p13  ;;  %p1037_p4 = por %p1036_p5, %p1035_p11 }
  0x62   : > { %p1038_p7 = pnand %p1037_p4, %p1031_p8 }
  0x64   : > { %1041 = shalt.err (!%p1038_p7)
}
  0x65   : > { %s1634_s8 = smov 4   ;;  %s1635_s3 = smov 64  }
  0x66   : > { %843 = dma.hbm_to_vmem [thread:$0]  (!%p1440_p1), %s1434_s24, 1024, %s1436_s6, %s1444_s7, %s1635_s3, %s1635_s3, %s1634_s8  }
  0x67   : > { %175 = sbr.rel (%p1378_p10) target bundleno = 388 (0x184), region = 28  ;;  %s177_s12 = sand.u32 (!%p1378_p10), 1, %s1168_s16  }
  0x68   : > { %s661_s26 = sshll.u32 (!%p1378_p10), %s177_s12, 6  ;;  %s178_s5 = scalar_lea.sflag (!%p1378_p10), [#allocation3], %s177_s12 }
  0x69   : > { %s1478_s27 = scalar_lea.vmem (!%p1378_p10), [#allocation2], %s661_s26  ;;  %p1636_p11 = scmp.ne.s32.totalorder (!%p1378_p10), %s1619_s29, 0 }
  0x6e   : > { %1127 = dma.done.wait (%p1636_p11), %s178_s5, 1024  }
  0x6f   : > { %1129 = vsyncadd (%p1636_p11), %s178_s5, 4294966272  ;;  %s186_s23 = sand.u32 1, %s1156_s13   ;;  %p1637_p10 = scmp.ne.s32.totalorder %s1628_s25, 0 }
  0x70   : > { %s662_s21 = sshll.u32 %s186_s23, 6  ;;  %s187_s6 = scalar_lea.sflag [#allocation6], %s186_s23 }
  0x71   : > { %s1485_s24 = scalar_lea.vmem [#allocation5], %s662_s21 }
  0x72   : > { %1131 = dma.done.wait (%p1637_p10), %s187_s6, 1024  }
  0x73   : > { %1133 = vsyncadd (%p1637_p10), %s187_s6, 4294966272  ;;  %v966_v0 = vld [vmem:[%s1485_s24] sm:$0xff]   ;;  %v967_v1 = vld [vmem:[%s1485_s24 + $0x8] sm:$0xff]   ;;  %s213_s29 = sand.u32 1, %s1144_s10   ;;  %s697_s25 = sshll.u32 %s1176_s18, 4 }
  0x74   : > { %783 = vmatprep.subr.bf16.mxu0 %v966_v0  ;;  %815 = vmatprep.subr.bf16.mxu1 %v966_v0  ;;  %v968_v2 = vld [vmem:[%s1485_s24 + $0x10] sm:$0xff]   ;;  %v969_v3 = vld [vmem:[%s1485_s24 + $0x18] sm:$0xff]   ;;  %v974_v4 = vld [vmem:[%s1478_s27] sm:$0xff]   ;;  %s663_s4 = sshll.u32 %s213_s29, 6  ;;  %s698_s7 = sshll.u32 %s1180_s19, 5 }
  0x75   : > { %784 = vmatpush3.bf16.msra.mxu0 %v966_v0  ;;  %823 = vmatpush3.bf16.msra.mxu1 %v966_v0  ;;  %v975_v5 = vld [vmem:[%s1478_s27 + $0x20] sm:$0xff]   ;;  %v971_v7 = vld [vmem:[%s1485_s24 + $0x28] sm:$0xff]   ;;  %v972_v8 = vld [vmem:[%s1485_s24 + $0x30] sm:$0xff]   ;;  %s215_s8 = scalar_lea.vmem [#allocation7], %s663_s4  ;;  %s537_s3 = sadd.s32 %s698_s7, %s697_s25 }
  0x76   : > { %785 = vmatprep.subr.bf16.mxu0 %v967_v1  ;;  %816 = vmatprep.subr.bf16.mxu1 %v967_v1  ;;  %v970_v6 = vld [vmem:[%s1485_s24 + $0x20] sm:$0xff]   ;;  %v973_v9 = vld [vmem:[%s1485_s24 + $0x38] sm:$0xff]   ;;  %v976_v10 = vld [vmem:[%s1478_s27 + $0x8] sm:$0xff]   ;;  %s540_s12 = sshll.u32 %s215_s8, 4  ;;  %s699_s26 = sshll.u32 %s537_s3, 6  ;;  %s1512_s12 = int_to_ptr.vmem [resolvable:$true] %s540_s12 }
  0x77   : > { %799 = vmatprep.mubr.bf16.mxu0 %v974_v4  ;;  %807 = vmatprep.mubr.bf16.mxu1 %v975_v5  ;;  %v977_v11 = vld [vmem:[%s1478_s27 + $0x28] sm:$0xff]   ;;  %v978_v12 = vld [vmem:[%s1478_s27 + $0x10] sm:$0xff]   ;;  %v980_v14 = vld [vmem:[%s1478_s27 + $0x18] sm:$0xff]   ;;  %s1517_s5 = scalar_lea.hbm %s1599_s2, %s699_s26  ;;  %s1042_s23 = scalar_lea.vmem %s1512_s12, 1024 }
  0x78   : > { %v979_v13 = vld [vmem:[%s1478_s27 + $0x30] sm:$0xff]   ;;  %v981_v15 = vld [vmem:[%s1478_s27 + $0x38] sm:$0xff]   ;;  %s1521_s27 = scalar_lea.sflag [#allocation4], %s213_s29  ;;  %p1043_p8 = scmp.ne.s32.totalorder %s1512_s12, %s1042_s23 }
  0x79   : > { %786 = vmatpush3.bf16.msra.mxu0 %v967_v1  ;;  %824 = vmatpush3.bf16.msra.mxu1 %v967_v1  ;;  %p1638_p12 = scmp.ne.s32.totalorder %s1629_s20, 0  ;;  %s1198_s21 = smov [#allocation7]  }
  0x7a   : > { %787 = vmatprep.subr.bf16.mxu0 %v968_v2  ;;  %817 = vmatprep.subr.bf16.mxu1 %v968_v2  ;;  %s1046_s6 = sshll.u32 %s1198_s21, 4  ;;  %s1047_s6 = int_to_ptr.vmem [resolvable:$false] %s1046_s6 }
  0x7b   : > { %p1044_p1 = pnand %p1043_p8, %p1638_p12  ;;  %s1048_s24 = scalar_lea.vmem %s1047_s6, 2048 }
  0x7c   : > { %p1049_p3 = scmp.lt.s32.totalorder %s1512_s12, %s1047_s6  ;;  %p1050_p9 = scmp.lt.s32.totalorder %s1048_s24, %s1042_s23 }
  0x7d   : > { %788 = vmatpush3.bf16.msra.mxu0 %v968_v2  ;;  %825 = vmatpush3.bf16.msra.mxu1 %v968_v2  ;;  %p1045_p0 = pneg %p1044_p1 }
  0x7e   : > { %789 = vmatprep.subr.bf16.mxu0 %v969_v3  ;;  %818 = vmatprep.subr.bf16.mxu1 %v969_v3  ;;  %p1051_p2 = por %p1050_p9, %p1049_p3 }
  0x80   : > { %p1052_p6 = pnand %p1051_p2, %p1045_p0 }
  0x81   : > { %790 = vmatpush3.bf16.msra.mxu0 %v969_v3  ;;  %826 = vmatpush3.bf16.msra.mxu1 %v969_v3 }
  0x82   : > { %791 = vmatprep.subr.bf16.mxu0 %v970_v6  ;;  %819 = vmatprep.subr.bf16.mxu1 %v970_v6 }
  0x85   : > { %792 = vmatpush3.bf16.msra.mxu0 %v970_v6  ;;  %827 = vmatpush3.bf16.msra.mxu1 %v970_v6 }
  0x86   : > { %793 = vmatprep.subr.bf16.mxu0 %v971_v7  ;;  %820 = vmatprep.subr.bf16.mxu1 %v971_v7 }
  0x89   : > { %794 = vmatpush3.bf16.msra.mxu0 %v971_v7  ;;  %828 = vmatpush3.bf16.msra.mxu1 %v971_v7 }
  0x8a   : > { %795 = vmatprep.subr.bf16.mxu0 %v972_v8  ;;  %821 = vmatprep.subr.bf16.mxu1 %v972_v8 }
  0x8d   : > { %796 = vmatpush3.bf16.msra.mxu0 %v972_v8  ;;  %829 = vmatpush3.bf16.msra.mxu1 %v972_v8 }
  0x8e   : > { %797 = vmatprep.subr.bf16.mxu0 %v973_v9  ;;  %822 = vmatprep.subr.bf16.mxu1 %v973_v9 }
  0x91   : > { %798 = vmatpush3.bf16.msra.mxu0 %v973_v9  ;;  %830 = vmatpush3.bf16.msra.mxu1 %v973_v9 }
  0x94   : > { %800 = vmatmul.mubr.bf16.vlgmr.msra.gmra.mrb[0].mxu0 %v976_v10  ;;  %808 = vmatmul.mubr.bf16.vlgmr.msra.gmra.mrb[0].mxu1 %v977_v11 }
  0x95   : > { %803 = vmatprep.mubr.bf16.mxu0 %v978_v12  ;;  %811 = vmatprep.mubr.bf16.mxu1 %v979_v13 }
  0x9c   : > { %804 = vmatmul.mubr.bf16.gmra.mrb[4].mxu0 %v980_v14  ;;  %812 = vmatmul.mubr.bf16.gmra.mrb[4].mxu1 %v981_v15 }
 0x167   : > { %v801_v16 = vpop.f32.mrb[0].mxu0  ;;  %v809_v17 = vpop.f32.mrb[0].mxu1 }
 0x168   : > { %v381_v18 = vpop.f32.mrb[1].mxu0  ;;  %v413_v19 = vpop.f32.mrb[1].mxu1 }
 0x169   : > { %v802_v20 = vpop.f32.mrb[2].mxu0  ;;  %v810_v21 = vpop.f32.mrb[2].mxu1 }
 0x16a   : > { %v728_v22 = vpack.c.bf16 %v802_v20, %v801_v16  ;;  %v748_v23 = vpack.c.bf16 %v810_v21, %v809_v17  ;;  %v384_v24 = vpop.f32.mrb[3].mxu0  ;;  %v416_v25 = vpop.f32.mrb[3].mxu1 }
 0x16b   : > { %v723_v26 = vpack.c.bf16 %v384_v24, %v381_v18  ;;  %v743_v27 = vpack.c.bf16 %v416_v25, %v413_v19 }
 0x16c   : > { %760 = vst [vmem:[%s215_s8 + $0x8] sm:$0xff] %v728_v22   ;;  %764 = vst [vmem:[%s215_s8 + $0x28] sm:$0xff] %v748_v23  }
 0x16d   : > { %724 = vst [vmem:[%s215_s8] sm:$0xff] %v723_v26   ;;  %763 = vst [vmem:[%s215_s8 + $0x20] sm:$0xff] %v743_v27  }
 0x16f   : > { %v805_v28 = vpop.f32.mrb[4].mxu0  ;;  %v813_v29 = vpop.f32.mrb[4].mxu1 }
 0x170   : > { %v397_v30 = vpop.f32.mrb[5].mxu0  ;;  %v429_v31 = vpop.f32.mrb[5].mxu1 }
 0x171   : > { %v806_v32 = vpop.f32.mrb[6].mxu0  ;;  %v814_v33 = vpop.f32.mrb[6].mxu1 }
 0x172   : > { %v738_v34 = vpack.c.bf16 %v806_v32, %v805_v28  ;;  %v758_v35 = vpack.c.bf16 %v814_v33, %v813_v29  ;;  %v400_v36 = vpop.f32.mrb[7].mxu0  ;;  %v432_v37 = vpop.f32.mrb[7].mxu1 }
 0x173   : > { %v733_v38 = vpack.c.bf16 %v400_v36, %v397_v30  ;;  %v753_v39 = vpack.c.bf16 %v432_v37, %v429_v31 }
 0x174   : > { %762 = vst [vmem:[%s215_s8 + $0x18] sm:$0xff] %v738_v34   ;;  %766 = vst [vmem:[%s215_s8 + $0x38] sm:$0xff] %v758_v35  }
 0x175   : > { %761 = vst [vmem:[%s215_s8 + $0x10] sm:$0xff] %v733_v38   ;;  %765 = vst [vmem:[%s215_s8 + $0x30] sm:$0xff] %v753_v39  }
 0x176   : > { %1055 = shalt.err (!%p1052_p6)
}
 0x177   : > { %s1056_s29 = scalar_lea.hbm %s1517_s5, 1024  ;;  %s1060_s7 = scalar_lea.hbm %s1599_s2, 10240 }
 0x178   : > { %p1057_p13 = scmp.ne.s32.totalorder %s1517_s5, %s1056_s29  ;;  %p1061_p7 = scmp.lt.u32.totalorder %s1517_s5, %s1599_s2 }
 0x179   : > { %p1062_p11 = scmp.lt.u32.totalorder %s1060_s7, %s1056_s29  ;;  %p1064_p8 = scmp.lt.u32.totalorder %s1056_s29, %s1517_s5 }
 0x17a   : > { %p1058_p5 = pnand %p1057_p13, %p1638_p12 }
 0x17b   : > { %p1063_p10 = por %p1062_p11, %p1061_p7 }
 0x17c   : > { %p1059_p4 = pneg %p1058_p5 }
 0x17d   : > { %p1065_p1 = por %p1064_p8, %p1063_p10 }
 0x17f   : > { %p1066_p0 = pnand %p1065_p1, %p1059_p4 }
 0x181   : > { %1069 = shalt.err (!%p1066_p0)
}
 0x182   : > { %s1199_s26 = smov 64   ;;  %s1200_s18 = smov 4  }
 0x183   : > { %835 = dma.vmem_to_hbm [thread:$0]  (%p1638_p12), %s1512_s12, 1024, %s1517_s5, %s1521_s27, %s1199_s26, %s1199_s26, %s1200_s18  }
 0x184 PF: > { %p849_p3 = scmp.ge.s32.totalorder %s1192_s22, 2  ;;  %s555_s19 = sand.u32 1, %s1140_s9  }
 0x185   : > { %p1639_p9 = scmp.ne.s32.totalorder %s1631_s0, 0  ;;  %s556_s23 = scalar_lea.sflag [#allocation4], %s555_s19 }
 0x187   : > { %p845_p2 = pnand %p849_p3, %p1639_p9 }
 0x189   : > { %1135 = dma.done.wait (!%p845_p2), %s556_s23, 1024  }
 0x18a   : > { %1137 = vsyncadd (!%p845_p2), %s556_s23, 4294966272  ;;  %s21_s22 = sadd.s32 1, %s1192_s22   ;;  %s1641_s18 = sld [smem:[#allocation11_spill]] }
 0x18b   : > { %p1550_p6 = scmp.ge.s32.totalorder %s21_s22, 12   ;;  %s1642_s19 = sld [smem:[#allocation12_spill]] }
 0x18c   : > { %s1643_s20 = sld [smem:[#allocation13_spill]]  ;;  %s1644_s0 = sld [smem:[#allocation14_spill]] }
 0x18d   : > { %s1646_s9 = smov %s1144_s10  ;;  %s1647_s10 = smov %s1148_s11 }
 0x18e   : > { %s1648_s11 = smov %s1418_s28  ;;  %s1649_s12 = smov %s1156_s13 }
 0x18f   : > { %s1650_s13 = smov %s1160_s14  ;;  %s1651_s14 = smov %s1415_s15 }
 0x190   : > { %s1652_s15 = smov %s1168_s16  ;;  %s1653_s16 = smov %s1172_s17 }
 0x191   : > { %s1654_s17 = smov %s1319_s30  ;;  %20 = sbr.rel (!%p1550_p6) target bundleno = 14 (0xe), region = 86 }
 0x192   : > { %s1655_s21 = smov %s1644_s0 }
 0x198   :  { %561 = vsyncpa [#allocation3], 1 }
 0x199   :  { %563 = vsyncpa [#allocation3 + $0x1], 1 }
 0x19a   :  { %564 = vsyncpa [#allocation6], 1 }
 0x19b   :  { %566 = vsyncpa [#allocation6 + $0x1], 1 }
 0x19c   :  { %567 = vsyncpa [#allocation4], 1 }
 0x19d   :  { %569 = vsyncpa [#allocation4 + $0x1], 1 }

// kernel: graph_classifier_forward.3
= control target key start
LH: loop header
LB: loop body
LE: loop exit
PB: predicated region body
PF: predicated region fallthrough
CT: control target
= control target key end

     0   :  { %s2930_s0 = inlined_call_operand.hbm [shape: bf16[4,256,256], index: 0, kind: input, shape index: {}]   ;;  %s2931_s1 = inlined_call_operand.hbm [shape: bf16[5,256,128], index: 1, kind: input, shape index: {}, may-alias: {1,2}]   ;;  %s2932_s2 = inlined_call_operand.hbm [shape: bf16[5,256,128], index: 2, kind: input, shape index: {}, may-alias: {1,2}]   ;;  %s2933_s3 = inlined_call_operand.hbm [shape: f32[256,1], index: 3, kind: input, shape index: {}]   ;;  %s2934_s4 = inlined_call_operand.hbm [shape: f32[2,256], index: 4, kind: input, shape index: {}]   ;;  %s2935_s5 = inlined_call_operand.hbm [shape: f32[256,128], index: 5, kind: output, shape index: {0}]   ;;  %s2936_s6 = inlined_call_operand.hbm [shape: f32[2,2,128], index: 6, kind: output, shape index: {1}]  }
   0x1   :  { %2967 = sst [smem:[#allocation36_spill]] %s2931_s1 }
   0x2   :  { %2968 = sst [smem:[#allocation37_spill]] %s2933_s3 }
   0x3   :  { %2969 = sst [smem:[#allocation38_spill]] %s2935_s5 }
   0x4   :  { %2970 = sst [smem:[#allocation39_spill]] %s2936_s6 }
   0x5   :  { %12 = vsyncpa [#allocation3], 0 }
   0x6   :  { %14 = vsyncpa [#allocation3 + $0x1], 0 }
   0x7   :  { %15 = vsyncpa [#allocation6], 0 }
   0x8   :  { %17 = vsyncpa [#allocation6 + $0x1], 0 }
   0x9   :  { %18 = vsyncpa [#allocation9], 0 }
   0xa   :  { %20 = vsyncpa [#allocation9 + $0x1], 0 }
   0xb   :  { %21 = vsyncpa [#allocation4], 0 }
   0xc   :  { %23 = vsyncpa [#allocation4 + $0x1], 0 }
   0xd   :  { %24 = vsyncpa [#allocation13], 0 }
   0xe   :  { %26 = vsyncpa [#allocation13 + $0x1], 0  ;;  %s2236_s21 = smov 0   ;;  %s2238_s22 = smov 0  }
   0xf   :  { %s2240_s23 = smov 0   ;;  %s2242_s24 = smov 0  }
  0x10   :  { %s2244_s25 = smov 0   ;;  %s2246_s26 = smov 0  }
  0x11   :  { %s2248_s27 = smov 0   ;;  %s2250_s28 = smov 0  }
  0x12   :  { %s2252_s29 = smov 0   ;;  %s2254_s30 = smov 0  }
  0x13   :  { %s2256_s7 = smov 0   ;;  %s2258_s8 = smov 0  }
  0x14   :  { %s2260_s9 = smov 0   ;;  %s2262_s10 = smov 0  }
  0x15 LB: > { %2971 = sst [smem:[#allocation20_spill]] %s2129_s21  ;;  %s2307_s11 = sadd.s32 4294967295, %s2181_s10   ;;  %s2181_s10 = sphi %s2262_s10, %s32_s10   ;;  %s2177_s9 = sphi %s2260_s9, %s3056_s9   ;;  %s2173_s8 = sphi %s2258_s8, %s3048_s8   ;;  %s2169_s7 = sphi %s2256_s7, %s3055_s7   ;;  %s2165_s30 = sphi %s2254_s30, %s3054_s30   ;;  %s2161_s29 = sphi %s2252_s29, %s3046_s29   ;;  %s2157_s28 = sphi %s2250_s28, %s3053_s28   ;;  %s2153_s27 = sphi %s2248_s27, %s3052_s27   ;;  %s2149_s26 = sphi %s2246_s26, %s3044_s26   ;;  %s2145_s25 = sphi %s2244_s25, %s3051_s25   ;;  %s2141_s24 = sphi %s2242_s24, %s3050_s24   ;;  %s2137_s23 = sphi %s2240_s23, %s3042_s23   ;;  %s2133_s22 = sphi %s2238_s22, %s3041_s22   ;;  %s2129_s21 = sphi %s2236_s21, %s3040_s21  }
  0x16   : > { %2972 = sst [smem:[#allocation21_spill]] %s2133_s22  ;;  %s41_s12 = sadd.s32 1, %s2173_s8 }
  0x17   : > { %2973 = sst [smem:[#allocation22_spill]] %s2137_s23  ;;  %p42_p0 = scmp.ge.s32.totalorder %s41_s12, 4 }
  0x18   : > { %2974 = sst [smem:[#allocation23_spill]] %s2149_s26  ;;  %s44_s13 = sadd.s32 1, %s2177_s9 }
  0x19   : > { %2975 = sst [smem:[#allocation24_spill]] %s2161_s29  ;;  %p2945_p1 = scmp.eq.s32.totalorder %s2181_s10, 0 }
  0x1a   : > { %2976 = sst [smem:[#allocation25_spill]] %s2165_s30  ;;  %p2944_p2 = scmp.eq.s32.totalorder %s2307_s11, 0 }
  0x1b   : > { %2977 = sst [smem:[#allocation26_spill]] %s2169_s7  ;;  %s3058_s12 = smov (%p42_p0, %s41_s12), 0 }
  0x1c   : > { %2978 = sst [smem:[#allocation27_spill]] %s2173_s8  ;;  %s3060_s13 = smov (!%p42_p0, %s44_s13), %s2177_s9 }
  0x1d   : > { %2979 = sst [smem:[#allocation28_spill]] %s3058_s12  ;;  %s48_s14 = ssub.s32 %s2173_s8, %s3058_s12 }
  0x1e   : > { %s79_s15 = sadd.s32 1, %s2149_s26  ;;  %p46_p3 = scmp.ge.s32.totalorder %s3060_s13, 2 }
  0x1f   : > { %p77_p4 = scmp.eq.s32.totalorder %s48_s14, 0  ;;  %p86_p5 = scmp.ne.s32.totalorder %s2149_s26, %s2145_s25 }
  0x20   : > { %p92_p6 = scmp.ne.s32.totalorder %s2145_s25, %s2141_s24  ;;  %s3062_s13 = smov (%p46_p3, %s3060_s13), 0 }
  0x21   : > { %2980 = sst [smem:[#allocation29_spill]] %s3062_s13  ;;  %s2330_s17 = ssub.s32 %s2177_s9, %s3062_s13 }
  0x22   : > { %s2326_s16 = scalar_select %p77_p4, %s2149_s26, %s79_s15  }
  0x23   : > { %p2334_p7 = por %p86_p5, %p2945_p1  ;;  %s50_s19 = sor.u32 %s2330_s17, %s48_s14 }
  0x24   : > { %2981 = sst [smem:[#allocation30_spill]] %s2326_s16  ;;  %p2341_p8 = por %p92_p6, %p2944_p2 }
  0x25   : > { %p2345_p9 = scmp.eq.s32.totalorder %s50_s19, 0  ;;  %p2943_p11 = scmp.lt.s32.totalorder %s2181_s10, 8 }
  0x26   : > { %s2983_s20 = scalar_select %p2341_p8, 1, 0 }
  0x27   : > { %s2984_s24 = scalar_select %p2345_p9, 1, 0 }
  0x28   : > { %s272_s13 = sand.u32 1, %s2149_s26   ;;  %s1437_s16 = sshll.u32 %s2173_s8, 11 }
  0x29   : > { %s1376_s12 = sshll.u32 %s272_s13, 7  ;;  %s2985_s1 = sld [smem:[#allocation36_spill]] }
  0x2a   : > { %s274_s14 = scalar_lea.vmem [#allocation5], %s1376_s12  ;;  %p2365_p12 = pnand %p2943_p11, %p2334_p7 }
  0x2b   : > { %s281_s19 = sshll.u32 %s274_s14, 4  ;;  %s2987_s5 = sand.u32 1, %s2181_s10   ;;  %s2359_s19 = int_to_ptr.vmem [resolvable:$true] %s281_s19 }
  0x2c   : > { %s2372_s6 = scalar_lea.sflag [#allocation6], %s2987_s5  ;;  %p1842_p3 = pneg %p2365_p12 }
  0x2f   : > { %s2357_s7 = scalar_lea.hbm %s2985_s1, %s1437_s16  ;;  %s1845_s18 = scalar_lea.hbm %s2985_s1, 10240 }
  0x30   : > { %s1840_s13 = scalar_lea.hbm %s2357_s7, 2048  ;;  %p1846_p6 = scmp.lt.u32.totalorder %s2357_s7, %s2985_s1 }
  0x31   : > { %p1841_p0 = scmp.ne.s32.totalorder %s2357_s7, %s1840_s13  ;;  %p1847_p7 = scmp.lt.u32.totalorder %s1845_s18, %s1840_s13 }
  0x32   : > { %p1849_p2 = scmp.lt.u32.totalorder %s1840_s13, %s2357_s7 }
  0x33   : > { %p1843_p4 = pnand %p1842_p3, %p1841_p0  ;;  %p1848_p11 = por %p1847_p7, %p1846_p6 }
  0x35   : > { %p1844_p5 = pneg %p1843_p4  ;;  %p1850_p1 = por %p1849_p2, %p1848_p11 }
  0x37   : > { %p1851_p10 = pnand %p1850_p1, %p1844_p5 }
  0x39   : > { %1854 = shalt.err (!%p1851_p10)
}
  0x3a   : > { %s1855_s5 = scalar_lea.vmem %s2359_s19, 2048  ;;  %s2183_s12 = smov [#allocation5]  }
  0x3b   : > { %p1856_p0 = scmp.ne.s32.totalorder %s2359_s19, %s1855_s5  ;;  %s1860_s16 = sshll.u32 %s2183_s12, 4  ;;  %s1861_s16 = int_to_ptr.vmem [resolvable:$false] %s1860_s16 }
  0x3c   : > { %s1862_s26 = scalar_lea.vmem %s1861_s16, 4096  ;;  %p1863_p8 = scmp.lt.s32.totalorder %s2359_s19, %s1861_s16 }
  0x3d   : > { %p1858_p4 = pnand %p1856_p0, %p1842_p3  ;;  %p1864_p6 = scmp.lt.s32.totalorder %s1862_s26, %s1855_s5 }
  0x3f   : > { %p1859_p13 = pneg %p1858_p4  ;;  %p1865_p7 = por %p1864_p6, %p1863_p8 }
  0x41   : > { %p1866_p2 = pnand %p1865_p7, %p1859_p13 }
  0x43   : > { %1869 = shalt.err (!%p1866_p2)
}
  0x44   : > { %s2947_s13 = smov 64   ;;  %s2948_s18 = smov 4  }
  0x45   : > { %1656 = dma.hbm_to_vmem [thread:$0]  (!%p2365_p12), %s2357_s7, 2048, %s2359_s19, %s2372_s6, %s2947_s13, %s2947_s13, %s2948_s18  }
  0x46   : > { %p350_p1 = scmp.lt.s32.totalorder %s2181_s10, 9  ;;  %p2988_p8 = scmp.ge.s32.totalorder %s2181_s10, 1 }
  0x47   : > { %s1368_s5 = sadd.s32 4294967294, %s2181_s10   ;;  %s105_s12 = sadd.s32 1, %s2137_s23 }
  0x48   : > { %p2406_p10 = pnand %p2988_p8, %p350_p1  ;;  %p2990_p11 = scmp.eq.s32.totalorder %s2330_s17, 0 }
  0x49   : > { %p112_p13 = scmp.ne.s32.totalorder %s2137_s23, %s2133_s22  ;;  %p118_p3 = scmp.ne.s32.totalorder %s2133_s22, %s2129_s21 }
  0x4a   : > { %s2989_s14 = scalar_select %p2406_p10, 1, 0 }
  0x4b   : > { %s2415_s16 = scalar_select %p2990_p11, %s2137_s23, %s105_s12  }
  0x4c   : > { %p194_p5 = scmp.eq.s32.totalorder %s2307_s11, 7  ;;  %p200_p0 = scmp.eq.s32.totalorder %s1368_s5, 7 }
  0x4d   : > { %2991 = sst [smem:[#allocation31_spill]] %s2415_s16  ;;  %p2992_p4 = scmp.eq.s32.totalorder %s2181_s10, 0 }
  0x4e   : > { %p2993_p12 = scmp.eq.s32.totalorder %s2307_s11, 0  ;;  %p2430_p2 = por %p194_p5, %p112_p13 }
  0x4f   : > { %p114_p6 = por %p112_p13, %p2992_p4  ;;  %p2434_p1 = por %p200_p0, %p118_p3 }
  0x50   : > { %p2426_p7 = por %p118_p3, %p2993_p12  ;;  %s2439_s19 = sand.u32 1, %s2137_s23  }
  0x51   : > { %s2996_s15 = scalar_select %p2430_p2, 1, 0 }
  0x52   : > { %s2994_s7 = scalar_select %p2426_p7, 1, 0 }
  0x53   : > { %2997 = sst [smem:[#allocation33_spill]] %s2996_s15  ;;  %p3000_p8 = scmp.lt.s32.totalorder %s2181_s10, 8 }
  0x54   : > { %2995 = sst [smem:[#allocation32_spill]] %s2994_s7  ;;  %s1382_s5 = sshll.u32 %s2439_s19, 7 }
  0x55   : > { %s2998_s17 = scalar_select %p2434_p1, 1, 0 }
  0x56   : > { %p2443_p11 = pnand %p3000_p8, %p114_p6  ;;  %s1439_s12 = sshll.u32 %s2177_s9, 11 }
  0x57   : > { %2999 = sst [smem:[#allocation34_spill]] %s2998_s17  ;;  %s317_s13 = scalar_lea.vmem [#allocation8], %s1382_s5 }
  0x58   : > { %s3001_s26 = scalar_select %p2443_p11, 1, 0 }
  0x59   : > { %s324_s18 = sshll.u32 %s317_s13, 4  ;;  %s3002_s3 = sld [smem:[#allocation37_spill]]  ;;  %s2454_s18 = int_to_ptr.vmem [resolvable:$true] %s324_s18 }
  0x5a   : > { %s3003_s23 = sand.u32 1, %s2181_s10   ;;  %p2464_p3 = pneg %p2443_p11 }
  0x5b   : > { %s2458_s17 = scalar_lea.sflag [#allocation9], %s3003_s23 }
  0x5f   : > { %s2452_s21 = scalar_lea.hbm %s3002_s3, %s1439_s12  ;;  %s1875_s16 = scalar_lea.hbm %s3002_s3, 4096 }
  0x60   : > { %s1870_s15 = scalar_lea.hbm %s2452_s21, 2048  ;;  %p1876_p4 = scmp.lt.u32.totalorder %s2452_s21, %s3002_s3 }
  0x61   : > { %p1871_p13 = scmp.ne.s32.totalorder %s2452_s21, %s1870_s15  ;;  %p1877_p6 = scmp.lt.u32.totalorder %s1875_s16, %s1870_s15 }
  0x62   : > { %p1879_p8 = scmp.lt.u32.totalorder %s1870_s15, %s2452_s21 }
  0x63   : > { %p1873_p5 = pnand %p2464_p3, %p1871_p13  ;;  %p1878_p12 = por %p1877_p6, %p1876_p4 }
  0x65   : > { %p1874_p0 = pneg %p1873_p5  ;;  %p1880_p1 = por %p1879_p8, %p1878_p12 }
  0x67   : > { %p1881_p2 = pnand %p1880_p1, %p1874_p0 }
  0x69   : > { %1884 = shalt.err (!%p1881_p2)
}
  0x6a   : > { %s1885_s23 = scalar_lea.vmem %s2454_s18, 2048  ;;  %s2186_s1 = smov [#allocation8]  }
  0x6b   : > { %p1886_p13 = scmp.ne.s32.totalorder %s2454_s18, %s1885_s23  ;;  %s1890_s13 = sshll.u32 %s2186_s1, 4  ;;  %s1891_s13 = int_to_ptr.vmem [resolvable:$false] %s1890_s13 }
  0x6c   : > { %s1892_s30 = scalar_lea.vmem %s1891_s13, 4096  ;;  %p1893_p10 = scmp.lt.s32.totalorder %s2454_s18, %s1891_s13 }
  0x6d   : > { %p1888_p5 = pnand %p1886_p13, %p2464_p3  ;;  %p1894_p9 = scmp.lt.s32.totalorder %s1892_s30, %s1885_s23 }
  0x6f   : > { %p1889_p7 = pneg %p1888_p5  ;;  %p1895_p4 = por %p1894_p9, %p1893_p10 }
  0x71   : > { %p1896_p6 = pnand %p1895_p4, %p1889_p7 }
  0x73   : > { %1899 = shalt.err (!%p1896_p6)
}
  0x74   : > { %s2956_s15 = smov 128   ;;  %s2957_s16 = smov 8  }
  0x75   : > { %1662 = dma.hbm_to_vmem [thread:$0]  (!%p2443_p11), %s2452_s21, 2048, %s2454_s18, %s2458_s17, %s2956_s15, %s2956_s15, %s2957_s16  }
  0x76   : > { %s53_s12 = sadd.s32 1, %s2161_s29  ;;  %p60_p9 = scmp.ne.s32.totalorder %s2161_s29, %s2157_s28 }
  0x77   : > { %p3005_p10 = scmp.ne.s32.totalorder %s2984_s24, 0  ;;  %p3007_p7 = scmp.eq.s32.totalorder %s2181_s10, 0 }
  0x78   : > { %p66_p1 = scmp.ne.s32.totalorder %s2157_s28, %s2153_s27  ;;  %s246_s13 = sand.u32 1, %s2161_s29  }
  0x79   : > { %s2497_s23 = scalar_select %p3005_p10, %s2161_s29, %s53_s12  }
  0x7a   : > { %p2501_p2 = por %p3007_p7, %p60_p9  ;;  %s2961_s30 = sshll.u32 %s2177_s9, 5 }
  0x7b   : > { %3006 = sst [smem:[#allocation35_spill]] %s2497_s23  ;;  %p3009_p0 = scmp.eq.s32.totalorder %s2307_s11, 0 }
  0x7c   : > { %s1371_s18 = sshll.u32 %s246_s13, 7  ;;  %s1374_s24 = sshll.u32 %s2173_s8, 6 }
  0x7d   : > { %p2511_p12 = por %p3009_p0, %p66_p1  ;;  %s257_s12 = sadd.s32 %s2961_s30, %s1374_s24 }
  0x7e   : > { %s1375_s15 = sshll.u32 %s257_s12, 6  ;;  %s250_s16 = scalar_lea.vmem [#allocation2], %s1371_s18 }
  0x7f   : > { %s3010_s21 = scalar_select %p2511_p12, 1, 0 }
  0x80   : > { %s260_s3 = sshll.u32 %s250_s16, 4  ;;  %s2521_s22 = scalar_lea.hbm %s2930_s0, %s1375_s15  ;;  %s2523_s3 = int_to_ptr.vmem [resolvable:$true] %s260_s3 }
  0x81   : > { %p3011_p8 = scmp.lt.s32.totalorder %s2181_s10, 8  ;;  %s1438_s18 = sshll.u32 %s2177_s9, 10 }
  0x82   : > { %s2538_s15 = scalar_lea.hbm %s2932_s2, %s1438_s18  ;;  %s2540_s23 = scalar_lea.sflag [#allocation3], %s246_s13 }
  0x83   : > { %p2529_p13 = pnand %p3011_p8, %p2501_p2  ;;  %s1900_s12 = scalar_lea.hbm %s2521_s22, 2048 }
  0x84   : > { %p1901_p5 = scmp.ne.s32.totalorder %s2521_s22, %s1900_s12  ;;  %s1905_s16 = scalar_lea.hbm %s2930_s0, 16384 }
  0x85   : > { %p1902_p4 = pneg %p2529_p13  ;;  %p1906_p10 = scmp.lt.u32.totalorder %s2521_s22, %s2930_s0 }
  0x86   : > { %p1907_p7 = scmp.lt.u32.totalorder %s1905_s16, %s1900_s12  ;;  %p1909_p1 = scmp.lt.u32.totalorder %s1900_s12, %s2521_s22 }
  0x87   : > { %p1903_p6 = pnand %p1902_p4, %p1901_p5 }
  0x88   : > { %p1908_p2 = por %p1907_p7, %p1906_p10 }
  0x89   : > { %p1904_p9 = pneg %p1903_p6 }
  0x8a   : > { %p1910_p0 = por %p1909_p1, %p1908_p2 }
  0x8c   : > { %p1911_p8 = pnand %p1910_p0, %p1904_p9 }
  0x8e   : > { %1914 = shalt.err (!%p1911_p8)
}
  0x8f   : > { %s1915_s13 = scalar_lea.vmem %s2523_s3, 2048  ;;  %s2189_s30 = smov [#allocation2]  }
  0x90   : > { %p1916_p5 = scmp.ne.s32.totalorder %s2523_s3, %s1915_s13  ;;  %s1920_s18 = sshll.u32 %s2189_s30, 4  ;;  %s1921_s18 = int_to_ptr.vmem [resolvable:$false] %s1920_s18 }
  0x91   : > { %s1922_s29 = scalar_lea.vmem %s1921_s18, 4096  ;;  %p1923_p11 = scmp.lt.s32.totalorder %s2523_s3, %s1921_s18 }
  0x92   : > { %p1918_p6 = pnand %p1916_p5, %p1902_p4  ;;  %p1924_p10 = scmp.lt.s32.totalorder %s1922_s29, %s1915_s13 }
  0x94   : > { %p1919_p12 = pneg %p1918_p6  ;;  %p1925_p7 = por %p1924_p10, %p1923_p11 }
  0x96   : > { %p1926_p2 = pnand %p1925_p7, %p1919_p12 }
  0x98   : > { %1929 = shalt.err (!%p1926_p2)
}
  0x99   : > { %s3013_s8 = smov 8   ;;  %s3014_s16 = smov 128  }
  0x9a   : > { %1653 = dma.hbm_to_vmem [thread:$0]  (!%p2529_p13), %s2521_s22, 2048, %s2523_s3, %s2540_s23, %s3014_s16, %s3014_s16, %s3013_s8  }
  0x9b   : > { %s2572_s24 = scalar_lea.hbm %s2538_s15, 8192  ;;  %s3015_s7 = sshll.u32 %s2439_s19, 6 }
  0x9c   : > { %s295_s12 = scalar_lea.vmem [#allocation7], %s3015_s7  ;;  %s1385_s1 = sshll.u32 %s2439_s19, 1 }
  0x9d   : > { %s303_s27 = sshll.u32 %s295_s12, 4  ;;  %s1960_s13 = scalar_lea.hbm %s2538_s15, 9216  ;;  %s2576_s27 = int_to_ptr.vmem [resolvable:$true] %s303_s27 }
  0x9e   : > { %p1931_p11 = scmp.ne.s32.totalorder %s2572_s24, %s1960_s13  ;;  %s1935_s3 = scalar_lea.hbm %s2932_s2, 10240 }
  0x9f   : > { %p1936_p13 = scmp.lt.u32.totalorder %s2572_s24, %s2932_s2  ;;  %p1937_p9 = scmp.lt.u32.totalorder %s1935_s3, %s1960_s13 }
  0xa0   : > { %p1933_p12 = pnand %p1931_p11, %p2464_p3  ;;  %p1939_p0 = scmp.lt.u32.totalorder %s1960_s13, %s2572_s24 }
  0xa1   : > { %p1938_p1 = por %p1937_p9, %p1936_p13 }
  0xa2   : > { %p1934_p4 = pneg %p1933_p12 }
  0xa3   : > { %p1940_p8 = por %p1939_p0, %p1938_p1 }
  0xa5   : > { %p1941_p5 = pnand %p1940_p8, %p1934_p4 }
  0xa7   : > { %1944 = shalt.err (!%p1941_p5)
}
  0xa8   : > { %s1945_s15 = scalar_lea.vmem %s2576_s27, 1024  ;;  %s2190_s29 = smov [#allocation7]  }
  0xa9   : > { %p1946_p6 = scmp.ne.s32.totalorder %s2576_s27, %s1945_s15  ;;  %s1950_s8 = sshll.u32 %s2190_s29, 4  ;;  %s1951_s8 = int_to_ptr.vmem [resolvable:$false] %s1950_s8 }
  0xaa   : > { %s1952_s16 = scalar_lea.vmem %s1951_s8, 2048  ;;  %p1953_p2 = scmp.lt.s32.totalorder %s2576_s27, %s1951_s8 }
  0xab   : > { %p1948_p10 = pnand %p1946_p6, %p2464_p3  ;;  %p1954_p11 = scmp.lt.s32.totalorder %s1952_s16, %s1945_s15 }
  0xad   : > { %p1949_p7 = pneg %p1948_p10  ;;  %p1955_p12 = por %p1954_p11, %p1953_p2 }
  0xaf   : > { %p1956_p13 = pnand %p1955_p12, %p1949_p7 }
  0xb1   : > { %1959 = shalt.err (!%p1956_p13)
}
  0xb2   : > { %p3016_p4 = scmp.ne.s32.totalorder %s3001_s26, 0  ;;  %s3017_s7 = smov 4  }
  0xb3   : > { %s3018_s12 = smov 64   ;;  %s3019_s13 = sshll.u32 %s2177_s9, 5 }
  0xb4   : > { %1659 = dma.hbm_to_vmem [thread:$0]  (!%p3016_p4), %s2572_s24, 1024, %s2576_s27, %s2372_s6, %s3018_s12, %s3018_s12, %s3017_s7  }
  0xb5   : > { %s2609_s3 = scalar_lea.hbm %s2934_s4, %s3019_s13  ;;  %s338_s22 = scalar_lea.vmem [#allocation10], %s1385_s1 }
  0xb6   : > { %s345_s23 = sshll.u32 %s338_s22, 4  ;;  %s1961_s15 = scalar_lea.hbm %s2609_s3, 32  ;;  %s346_s23 = int_to_ptr.vmem [resolvable:$true] %s345_s23 }
  0xb7   : > { %p1962_p9 = scmp.ne.s32.totalorder %s2609_s3, %s1961_s15  ;;  %s1966_s27 = scalar_lea.hbm %s2934_s4, 64 }
  0xb8   : > { %p1967_p8 = scmp.lt.u32.totalorder %s2609_s3, %s2934_s4  ;;  %p1968_p5 = scmp.lt.u32.totalorder %s1966_s27, %s1961_s15 }
  0xb9   : > { %p1964_p1 = pnand %p1962_p9, %p2464_p3  ;;  %p1970_p10 = scmp.lt.u32.totalorder %s1961_s15, %s2609_s3 }
  0xba   : > { %p1969_p6 = por %p1968_p5, %p1967_p8 }
  0xbb   : > { %p1965_p0 = pneg %p1964_p1 }
  0xbc   : > { %p1971_p7 = por %p1970_p10, %p1969_p6 }
  0xbe   : > { %p1972_p2 = pnand %p1971_p7, %p1965_p0 }
  0xc0   : > { %1975 = shalt.err (!%p1972_p2)
}
  0xc1   : > { %s1976_s19 = scalar_lea.vmem %s346_s23, 32  ;;  %s2191_s1 = smov [#allocation10]  }
  0xc2   : > { %p1977_p11 = scmp.ne.s32.totalorder %s346_s23, %s1976_s19  ;;  %s1981_s16 = sshll.u32 %s2191_s1, 4  ;;  %s1982_s16 = int_to_ptr.vmem [resolvable:$false] %s1981_s16 }
  0xc3   : > { %s1983_s7 = scalar_lea.vmem %s1982_s16, 64  ;;  %p1984_p9 = scmp.lt.s32.totalorder %s346_s23, %s1982_s16 }
  0xc4   : > { %p1979_p12 = pnand %p1977_p11, %p2464_p3  ;;  %p1985_p1 = scmp.lt.s32.totalorder %s1983_s7, %s1976_s19 }
  0xc6   : > { %p1980_p13 = pneg %p1979_p12  ;;  %p1986_p4 = por %p1985_p1, %p1984_p9 }
  0xc8   : > { %p1987_p5 = pnand %p1986_p4, %p1980_p13 }
  0xca   : > { %1990 = shalt.err (!%p1987_p5)
}
  0xcb   : > { %p3020_p8 = scmp.ne.s32.totalorder %s3001_s26, 0  ;;  %p3021_p0 = scmp.ne.s32.totalorder %s2989_s14, 0 }
  0xcc   : > { %s356_s5 = sand.u32 (!%p3021_p0), 1, %s2157_s28   ;;  %p3022_p3 = scmp.ne.s32.totalorder (!%p3021_p0), %s3010_s21, 0 }
  0xcd   : > { %1665 = dma.hbm_to_vmem [thread:$0]  (!%p3020_p8), %s2609_s3, 32, %s346_s23, %s2458_s17  }
  0xce   : > { %354 = sbr.rel (%p3021_p0) target bundleno = 941 (0x3ad), region = 40  ;;  %s1388_s12 = sshll.u32 (!%p3021_p0), %s356_s5, 7 }
  0xcf   : > { %s357_s13 = scalar_lea.sflag (!%p3021_p0), [#allocation3], %s356_s5  ;;  %s2634_s30 = scalar_lea.vmem (!%p3021_p0), [#allocation2], %s1388_s12 }
  0xd5   : > { %2104 = dma.done.wait (%p3022_p3), %s357_s13, 2048  }
  0xd6   : > { %2106 = vsyncadd (%p3022_p3), %s357_s13, 4294965248  ;;  %s365_s26 = sand.u32 1, %s2307_s11   ;;  %s367_s17 = sand.u32 1, %s2145_s25  }
  0xd7   : > { %s1389_s18 = sshll.u32 %s367_s17, 7  ;;  %s366_s14 = scalar_lea.sflag [#allocation6], %s365_s26 }
  0xd8   : > { %s2642_s3 = scalar_lea.vmem [#allocation5], %s1389_s18  ;;  %p3023_p4 = scmp.ne.s32.totalorder %s2983_s20, 0 }
  0xda   : > { %2108 = dma.done.wait (%p3023_p4), %s366_s14, 2048  }
  0xdb   : > { %2110 = vsyncadd (%p3023_p4), %s366_s14, 4294965248  ;;  %s3024_s22 = sld [smem:[#allocation21_spill]]  ;;  %s3025_s23 = sld [smem:[#allocation32_spill]] }
  0xe1   : > { %s2649_s15 = sand.u32 1, %s3024_s22   ;;  %p3026_p6 = scmp.ne.s32.totalorder %s3025_s23, 0 }
  0xe2   : > { %s1390_s21 = sshll.u32 %s2649_s15, 6 }
  0xe3   : > { %s2652_s6 = scalar_lea.vmem [#allocation7], %s1390_s21 }
  0xe4   : > { %2112 = dma.done.wait (%p3026_p6), %s366_s14, 1024  }
  0xe5   : > { %2114 = vsyncadd (%p3026_p6), %s366_s14, 4294966272  ;;  %s1391_s11 = sshll.u32 %s2649_s15, 7  ;;  %s384_s24 = scalar_lea.sflag [#allocation9], %s365_s26 }
  0xe6   : > { %s2659_s27 = scalar_lea.vmem [#allocation8], %s1391_s11 }
  0xe7   : > { %2116 = dma.done.wait (%p3026_p6), %s384_s24, 2080  }
  0xe8   : > { %2118 = vsyncadd (%p3026_p6), %s384_s24, 4294965216  ;;  %s1392_s20 = sshll.u32 %s2649_s15, 1  ;;  %s2668_s8 = scalar_lea.vmem [#allocation11], %s1391_s11 }
  0xe9   : > { %s2666_s29 = scalar_lea.vmem [#allocation10], %s1392_s20  ;;  %s2670_s19 = scalar_lea.vmem [#allocation12], %s1392_s20 }
  0xea   : > { %s3027_s1 = sld [smem:[#allocation25_spill]] }
  0xf0   : > { %p1395_p10 = scmp.ne.s32.totalorder %s3027_s1, 0 }
  0xf1   : > { %v2192_v0 = vmov (!%p1395_p10), 0.0  }
  0xf2   : > { %458 = sbr.rel (%p1395_p10) target bundleno = 250 (0xfa), region = 64  ;;  %459 = vst [vmem:[%s2668_s8] sm:$0xff] (!%p1395_p10), %v2192_v0  ;;  %460 = vst [vmem:[%s2668_s8 + $0x8] sm:$0xff] (!%p1395_p10), %v2192_v0 }
  0xf3   : > { %461 = vst [vmem:[%s2668_s8 + $0x10] sm:$0xff] (!%p1395_p10), %v2192_v0  ;;  %462 = vst [vmem:[%s2668_s8 + $0x18] sm:$0xff] (!%p1395_p10), %v2192_v0 }
  0xf4   : > { %463 = vst [vmem:[%s2668_s8 + $0x20] sm:$0xff] (!%p1395_p10), %v2192_v0  ;;  %464 = vst [vmem:[%s2668_s8 + $0x28] sm:$0xff] (!%p1395_p10), %v2192_v0 }
  0xf5   : > { %465 = vst [vmem:[%s2668_s8 + $0x30] sm:$0xff] (!%p1395_p10), %v2192_v0  ;;  %466 = vst [vmem:[%s2668_s8 + $0x38] sm:$0xff] (!%p1395_p10), %v2192_v0 }
  0xf6   : > { %467 = vst [vmem:[%s2668_s8 + $0x40] sm:$0xff] (!%p1395_p10), %v2192_v0  ;;  %468 = vst [vmem:[%s2668_s8 + $0x48] sm:$0xff] (!%p1395_p10), %v2192_v0 }
  0xf7   : > { %469 = vst [vmem:[%s2668_s8 + $0x50] sm:$0xff] (!%p1395_p10), %v2192_v0  ;;  %470 = vst [vmem:[%s2668_s8 + $0x58] sm:$0xff] (!%p1395_p10), %v2192_v0 }
  0xf8   : > { %471 = vst [vmem:[%s2668_s8 + $0x60] sm:$0xff] (!%p1395_p10), %v2192_v0  ;;  %472 = vst [vmem:[%s2668_s8 + $0x68] sm:$0xff] (!%p1395_p10), %v2192_v0 }
  0xf9   : > { %473 = vst [vmem:[%s2668_s8 + $0x70] sm:$0xff] %v2192_v0  ;;  %474 = vst [vmem:[%s2668_s8 + $0x78] sm:$0xff] %v2192_v0 }
  0xfa PF: > { %v1798_v1 = vld [vmem:[%s2642_s3 + $0x40] sm:$0xff]   ;;  %v1800_v3 = vld [vmem:[%s2642_s3 + $0x48] sm:$0xff]   ;;  %v1802_v5 = vld [vmem:[%s2642_s3 + $0x50] sm:$0xff]   ;;  %s3028_s16 = sld [smem:[#allocation25_spill]] }
  0xfb   : > { %v1799_v2 = vld [vmem:[%s2642_s3] sm:$0xff]   ;;  %1480 = vmatprep.subr.bf16.mxu0 %v1798_v1  ;;  %1620 = vmatprep.subr.bf16.mxu1 %v1798_v1  ;;  %v1801_v4 = vld [vmem:[%s2642_s3 + $0x8] sm:$0xff]   ;;  %v1803_v6 = vld [vmem:[%s2642_s3 + $0x10] sm:$0xff]  }
  0xfc   : > { %1481 = vmatpush3.bf16.msra.mxu0 %v1799_v2  ;;  %1628 = vmatpush3.bf16.msra.mxu1 %v1799_v2  ;;  %v1804_v7 = vld [vmem:[%s2642_s3 + $0x58] sm:$0xff]   ;;  %v1806_v9 = vld [vmem:[%s2642_s3 + $0x60] sm:$0xff]   ;;  %v1808_v11 = vld [vmem:[%s2642_s3 + $0x68] sm:$0xff]  }
  0xfd   : > { %1482 = vmatprep.subr.bf16.mxu0 %v1800_v3  ;;  %1621 = vmatprep.subr.bf16.mxu1 %v1800_v3  ;;  %v1805_v8 = vld [vmem:[%s2642_s3 + $0x18] sm:$0xff]   ;;  %v1807_v10 = vld [vmem:[%s2642_s3 + $0x20] sm:$0xff]   ;;  %v1809_v14 = vld [vmem:[%s2642_s3 + $0x28] sm:$0xff]  }
  0xfe   : > { %v1816_v12 = vld [vmem:[%s2634_s30 + $0x4] ss:$8 sps:$4 sm:$0xff]   ;;  %v1810_v15 = vld [vmem:[%s2642_s3 + $0x70] sm:$0xff]   ;;  %v1812_v17 = vld [vmem:[%s2642_s3 + $0x78] sm:$0xff]  }
  0xff   : > { %v1819_v13 = vld [vmem:[%s2634_s30 + $0x44] ss:$8 sps:$4 sm:$0xff]   ;;  %747 = vmatprep.mubr.bf16.mxu0 %v1816_v12  ;;  %v1811_v16 = vld [vmem:[%s2642_s3 + $0x30] sm:$0xff]   ;;  %v1813_v18 = vld [vmem:[%s2642_s3 + $0x38] sm:$0xff]  }
 0x100   : > { %1483 = vmatpush3.bf16.msra.mxu0 %v1801_v4  ;;  %1629 = vmatpush3.bf16.msra.mxu1 %v1801_v4  ;;  %v1814_v19 = vld [vmem:[%s2634_s30] ss:$8 sps:$4 sm:$0xff]   ;;  %v1820_v21 = vld [vmem:[%s2634_s30 + $0x14] ss:$8 sps:$4 sm:$0xff]   ;;  %v1824_v23 = vld [vmem:[%s2634_s30 + $0x10] ss:$8 sps:$4 sm:$0xff]  }
 0x101   : > { %1484 = vmatprep.subr.bf16.mxu0 %v1802_v5  ;;  %1622 = vmatprep.subr.bf16.mxu1 %v1802_v5  ;;  %v1817_v20 = vld [vmem:[%s2634_s30 + $0x40] ss:$8 sps:$4 sm:$0xff]   ;;  %v1822_v22 = vld [vmem:[%s2634_s30 + $0x54] ss:$8 sps:$4 sm:$0xff]   ;;  %v1825_v24 = vld [vmem:[%s2634_s30 + $0x50] ss:$8 sps:$4 sm:$0xff]  }
 0x102   : > { %779 = vmatprep.mubr.bf16.mxu1 %v1819_v13  ;;  %v1826_v25 = vld [vmem:[%s2634_s30 + $0x24] ss:$8 sps:$4 sm:$0xff]   ;;  %v1830_v27 = vld [vmem:[%s2634_s30 + $0x20] ss:$8 sps:$4 sm:$0xff]   ;;  %v1832_v29 = vld [vmem:[%s2634_s30 + $0x34] ss:$8 sps:$4 sm:$0xff]  }
 0x103   : > { %v1828_v26 = vld [vmem:[%s2634_s30 + $0x64] ss:$8 sps:$4 sm:$0xff]   ;;  %v1831_v28 = vld [vmem:[%s2634_s30 + $0x60] ss:$8 sps:$4 sm:$0xff]   ;;  %v1834_v30 = vld [vmem:[%s2634_s30 + $0x74] ss:$8 sps:$4 sm:$0xff]  }
 0x104   : > { %1485 = vmatpush3.bf16.msra.mxu0 %v1803_v6  ;;  %1630 = vmatpush3.bf16.msra.mxu1 %v1803_v6  ;;  %v1836_v31 = vld [vmem:[%s2634_s30 + $0x30] ss:$8 sps:$4 sm:$0xff]   ;;  %v475_v35 = vld [vmem:[%s2668_s8] sm:$0xff]  ;;  %v478_v63 = vld [vmem:[%s2668_s8 + $0x18] sm:$0xff]  ;;  %p1428_p7 = scmp.ne.s32.totalorder %s3028_s16, 3 }
 0x105   : > { %1486 = vmatprep.subr.bf16.mxu0 %v1804_v7  ;;  %1623 = vmatprep.subr.bf16.mxu1 %v1804_v7  ;;  %v1837_v32 = vld [vmem:[%s2634_s30 + $0x70] ss:$8 sps:$4 sm:$0xff]   ;;  %v483_v37 = vld [vmem:[%s2668_s8 + $0x40] sm:$0xff]  ;;  %v486_v1 = vld [vmem:[%s2668_s8 + $0x58] sm:$0xff]  ;;  %vm2195_vm0 = vmmov (!%p1428_p7), 0  }
 0x106   : > { %v476_v43 = vld [vmem:[%s2668_s8 + $0x8] sm:$0xff]  ;;  %v477_v55 = vld [vmem:[%s2668_s8 + $0x10] sm:$0xff]  ;;  %v487_v13 = vld [vmem:[%s2668_s8 + $0x60] sm:$0xff] }
 0x107   : > { %v484_v45 = vld [vmem:[%s2668_s8 + $0x48] sm:$0xff]  ;;  %v485_v57 = vld [vmem:[%s2668_s8 + $0x50] sm:$0xff] }
 0x108   : > { %1487 = vmatpush3.bf16.msra.mxu0 %v1805_v8  ;;  %1631 = vmatpush3.bf16.msra.mxu1 %v1805_v8 }
 0x109   : > { %1488 = vmatprep.subr.bf16.mxu0 %v1806_v9  ;;  %1624 = vmatprep.subr.bf16.mxu1 %v1806_v9 }
 0x10c   : > { %1489 = vmatpush3.bf16.msra.mxu0 %v1807_v10  ;;  %1632 = vmatpush3.bf16.msra.mxu1 %v1807_v10 }
 0x10d   : > { %1490 = vmatprep.subr.bf16.mxu0 %v1808_v11  ;;  %1625 = vmatprep.subr.bf16.mxu1 %v1808_v11  ;;  %v479_v11 = vld [vmem:[%s2668_s8 + $0x20] sm:$0xff] }
 0x110   : > { %1491 = vmatpush3.bf16.msra.mxu0 %v1809_v14  ;;  %1633 = vmatpush3.bf16.msra.mxu1 %v1809_v14 }
 0x111   : > { %1492 = vmatprep.subr.bf16.mxu0 %v1810_v15  ;;  %1626 = vmatprep.subr.bf16.mxu1 %v1810_v15 }
 0x114   : > { %1493 = vmatpush3.bf16.msra.mxu0 %v1811_v16  ;;  %1634 = vmatpush3.bf16.msra.mxu1 %v1811_v16 }
 0x115   : > { %1494 = vmatprep.subr.bf16.mxu0 %v1812_v17  ;;  %1627 = vmatprep.subr.bf16.mxu1 %v1812_v17 }
 0x118   : > { %1495 = vmatpush3.bf16.msra.mxu0 %v1813_v18  ;;  %1635 = vmatpush3.bf16.msra.mxu1 %v1813_v18 }
 0x11b   : > { %748 = vmatmul.mubr.bf16.vlgmr.msra.gmra.mrb[0].mxu0 %v1814_v19  ;;  %780 = vmatmul.mubr.bf16.vlgmr.msra.gmra.mrb[0].mxu1 %v1817_v20  ;;  %v480_v19 = vld [vmem:[%s2668_s8 + $0x28] sm:$0xff] }
 0x11c   : > { %755 = vmatprep.mubr.bf16.mxu0 %v1820_v21  ;;  %787 = vmatprep.mubr.bf16.mxu1 %v1822_v22  ;;  %v488_v21 = vld [vmem:[%s2668_s8 + $0x68] sm:$0xff] }
 0x123   : > { %756 = vmatmul.mubr.bf16.gmra.mrb[4].mxu0 %v1824_v23  ;;  %788 = vmatmul.mubr.bf16.gmra.mrb[4].mxu1 %v1825_v24 }
 0x124   : > { %763 = vmatprep.mubr.bf16.mxu0 %v1826_v25  ;;  %795 = vmatprep.mubr.bf16.mxu1 %v1828_v26 }
 0x12b   : > { %764 = vmatmul.mubr.bf16.gmra.mrb[8].mxu0 %v1830_v27  ;;  %796 = vmatmul.mubr.bf16.gmra.mrb[8].mxu1 %v1831_v28 }
 0x12c   : > { %771 = vmatprep.mubr.bf16.mxu0 %v1832_v29  ;;  %803 = vmatprep.mubr.bf16.mxu1 %v1834_v30 }
 0x133   : > { %772 = vmatmul.mubr.bf16.gmra.mrb[12].mxu0 %v1836_v31  ;;  %804 = vmatmul.mubr.bf16.gmra.mrb[12].mxu1 %v1837_v32  ;;  %v481_v31 = vld [vmem:[%s2668_s8 + $0x30] sm:$0xff] }
 0x1ee   : > { %v1496_v33 = vpop.f32.mrb[0].mxu0  ;;  %v1520_v34 = vpop.f32.mrb[0].mxu1 }
 0x1ef   : > { %v1497_v36 = vpop.f32.mrb[1].mxu0  ;;  %v1521_v38 = vpop.f32.mrb[1].mxu1 }
 0x1f0   : > { %v1498_v39 = vadd.f32 %v1497_v36, %v1496_v33  ;;  %v1522_v40 = vadd.f32 %v1521_v38, %v1520_v34  ;;  %v1499_v41 = vpop.f32.mrb[2].mxu0  ;;  %v1523_v42 = vpop.f32.mrb[2].mxu1  ;;  %v489_v33 = vld [vmem:[%s2668_s8 + $0x70] sm:$0xff] }
 0x1f1   : > { %v1500_v44 = vpop.f32.mrb[3].mxu0  ;;  %v1524_v46 = vpop.f32.mrb[3].mxu1 }
 0x1f2   : > { %v812_v47 = vadd.f32 %v1498_v39, %v475_v35  ;;  %v820_v48 = vadd.f32 %v1522_v40, %v483_v37  ;;  %v1501_v49 = vadd.f32 %v1500_v44, %v1499_v41  ;;  %v1525_v50 = vadd.f32 %v1524_v46, %v1523_v42  ;;  %v482_v39 = vld [vmem:[%s2668_s8 + $0x38] sm:$0xff] }
 0x1f3   : > { %v490_v41 = vld [vmem:[%s2668_s8 + $0x78] sm:$0xff] }
 0x1f4   : > { %828 = vst [vmem:[%s2668_s8] sm:$0xff] %v812_v47  ;;  %836 = vst [vmem:[%s2668_s8 + $0x40] sm:$0xff] %v820_v48  ;;  %v813_v51 = vadd.f32 %v1501_v49, %v476_v43  ;;  %v821_v52 = vadd.f32 %v1525_v50, %v484_v45  ;;  %v850_v49 = vld [vmem:[%s2659_s27 + $0x10] sm:$0xff] (!%p1428_p7)  ;;  %v848_v50 = vld [vmem:[%s2659_s27] sm:$0xff] (!%p1428_p7) }
 0x1f6   : > { %829 = vst [vmem:[%s2668_s8 + $0x8] sm:$0xff] %v813_v51  ;;  %837 = vst [vmem:[%s2668_s8 + $0x48] sm:$0xff] %v821_v52  ;;  %v1502_v53 = vpop.f32.mrb[4].mxu0  ;;  %v1526_v54 = vpop.f32.mrb[4].mxu1  ;;  %v2193_v51 = vmov (!%p1428_p7), 0   ;;  %v851_v52 = vld [vmem:[%s2659_s27 + $0x18] sm:$0xff] (!%p1428_p7) }
 0x1f7   : > { %v1503_v56 = vpop.f32.mrb[5].mxu0  ;;  %v1527_v58 = vpop.f32.mrb[5].mxu1  ;;  %1839 = vset.pattern.permute.xlu1 (!%p1428_p7), %v2193_v51  ;;  %1838 = vset.pattern.permute.xlu0 (!%p1428_p7), %v2193_v51 }
 0x1f8   : > { %v1504_v59 = vadd.f32 %v1503_v56, %v1502_v53  ;;  %v1528_v60 = vadd.f32 %v1527_v58, %v1526_v54  ;;  %v1505_v61 = vpop.f32.mrb[6].mxu0  ;;  %v1529_v62 = vpop.f32.mrb[6].mxu1  ;;  %892 = vperm.xlu1 (!%p1428_p7), %1839, %v850_v49   ;;  %882 = vperm.xlu0 (!%p1428_p7), %1838, %v848_v50   ;;  %v849_v53 = vld [vmem:[%s2659_s27 + $0x8] sm:$0xff] (!%p1428_p7)  ;;  %v855_v56 = vld [vmem:[%s2659_s27 + $0x38] sm:$0xff] (!%p1428_p7)  ;;  %v2194_v58 = vmov (!%p1428_p7), 0.0|0.0  }
 0x1f9   : > { %v1506_v0 = vpop.f32.mrb[7].mxu0  ;;  %v1530_v2 = vpop.f32.mrb[7].mxu1  ;;  %v853_v54 = vld [vmem:[%s2659_s27 + $0x28] sm:$0xff] (!%p1428_p7)  ;;  %1596 = vmatprep.subr.bf16.mxu0 (!%p1428_p7), %v2194_v58 }
 0x1fa   : > { %v814_v3 = vadd.f32 %v1504_v59, %v477_v55  ;;  %v822_v4 = vadd.f32 %v1528_v60, %v485_v57  ;;  %v1507_v5 = vadd.f32 %v1506_v0, %v1505_v61  ;;  %v1531_v6 = vadd.f32 %v1530_v2, %v1529_v62  ;;  %v852_v55 = vld [vmem:[%s2659_s27 + $0x20] sm:$0xff] (!%p1428_p7)  ;;  %v854_v57 = vld [vmem:[%s2659_s27 + $0x30] sm:$0xff] (!%p1428_p7)  ;;  %v857_v59 = vld [vmem:[%s2659_s27 + $0x48] sm:$0xff] (!%p1428_p7) }
 0x1fb   : > { %v856_v60 = vld [vmem:[%s2659_s27 + $0x40] sm:$0xff] (!%p1428_p7)  ;;  %v859_v61 = vld [vmem:[%s2659_s27 + $0x58] sm:$0xff] (!%p1428_p7)  ;;  %v858_v62 = vld [vmem:[%s2659_s27 + $0x50] sm:$0xff] (!%p1428_p7) }
 0x1fc   : > { %830 = vst [vmem:[%s2668_s8 + $0x10] sm:$0xff] %v814_v3  ;;  %838 = vst [vmem:[%s2668_s8 + $0x50] sm:$0xff] %v822_v4  ;;  %v815_v7 = vadd.f32 %v1507_v5, %v478_v63  ;;  %v823_v8 = vadd.f32 %v1531_v6, %v486_v1  ;;  %897 = vperm.xlu1 (!%p1428_p7), %1839, %v851_v52   ;;  %887 = vperm.xlu0 (!%p1428_p7), %1838, %v849_v53   ;;  %v861_v63 = vld [vmem:[%s2659_s27 + $0x68] sm:$0xff] (!%p1428_p7)  ;;  %v860_v0 = vld [vmem:[%s2659_s27 + $0x60] sm:$0xff] (!%p1428_p7)  ;;  %v2196_v3 = vmov (!%p1428_p7), 0.0  }
 0x1fd   : > { %v863_v1 = vld [vmem:[%s2659_s27 + $0x78] sm:$0xff] (!%p1428_p7)  ;;  %v862_v2 = vld [vmem:[%s2659_s27 + $0x70] sm:$0xff] (!%p1428_p7)  ;;  %1593 = vmatprep.mubr.msk.f32.mxu0 (!%p1428_p7), %vm2195_vm0, %v2196_v3  ;;  %v1473_v4 = vld [vmem:[%s2652_s6 + $0x8] sm:$0xff] (!%p1428_p7)  }
 0x1fe   : > { %831 = vst [vmem:[%s2668_s8 + $0x18] sm:$0xff] %v815_v7  ;;  %839 = vst [vmem:[%s2668_s8 + $0x58] sm:$0xff] %v823_v8  ;;  %v1508_v9 = vpop.f32.mrb[8].mxu0  ;;  %v1532_v10 = vpop.f32.mrb[8].mxu1  ;;  %v1442_v5 = vld [vmem:[%s2652_s6] sm:$0xff] (!%p1428_p7)   ;;  %v1447_v8 = vunpack.c.l.bf16 (!%p1428_p7), %v1473_v4 }
 0x1ff   : > { %v1509_v12 = vpop.f32.mrb[9].mxu0  ;;  %v1533_v14 = vpop.f32.mrb[9].mxu1  ;;  %v864_v7 = vld [vmem:[%s2668_s8] sm:$0xff] (!%p1428_p7) }
 0x200   : > { %v1510_v15 = vadd.f32 %v1509_v12, %v1508_v9  ;;  %v1534_v16 = vadd.f32 %v1533_v14, %v1532_v10  ;;  %v1511_v17 = vpop.f32.mrb[10].mxu0  ;;  %v1535_v18 = vpop.f32.mrb[10].mxu1  ;;  %907 = vperm.xlu1 (!%p1428_p7), %1839, %v853_v54   ;;  %902 = vperm.xlu0 (!%p1428_p7), %1838, %v852_v55   ;;  %v1443_v9 = vunpack.c.l.bf16 (!%p1428_p7), %v1442_v5  ;;  %v873_v54 = vld [vmem:[%s2668_s8 + $0x48] sm:$0xff] (!%p1428_p7) }
 0x201   : > { %v1512_v20 = vpop.f32.mrb[11].mxu0  ;;  %v1536_v22 = vpop.f32.mrb[11].mxu1 }
 0x202   : > { %v816_v23 = vadd.f32 %v1510_v15, %v479_v11  ;;  %v824_v24 = vadd.f32 %v1534_v16, %v487_v13  ;;  %v1513_v25 = vadd.f32 %v1512_v20, %v1511_v17  ;;  %v1537_v26 = vadd.f32 %v1536_v22, %v1535_v18  ;;  %v865_v15 = vld [vmem:[%s2668_s8 + $0x8] sm:$0xff] (!%p1428_p7) }
 0x203   : > { %v866_v6 = vld [vmem:[%s2668_s8 + $0x10] sm:$0xff] (!%p1428_p7)  ;;  %v1448_v18 = vunpack.c.h.bf16 (!%p1428_p7), %v1473_v4 }
 0x204   : > { %832 = vst [vmem:[%s2668_s8 + $0x20] sm:$0xff] %v816_v23  ;;  %840 = vst [vmem:[%s2668_s8 + $0x60] sm:$0xff] %v824_v24  ;;  %v817_v27 = vadd.f32 %v1513_v25, %v480_v19  ;;  %v825_v28 = vadd.f32 %v1537_v26, %v488_v21  ;;  %917 = vperm.xlu1 (!%p1428_p7), %1839, %v855_v56   ;;  %912 = vperm.xlu0 (!%p1428_p7), %1838, %v854_v57   ;;  %v1444_v19 = vunpack.c.h.bf16 (!%p1428_p7), %v1442_v5  ;;  %v1474_v22 = vld [vmem:[%s2652_s6 + $0x10] sm:$0xff] (!%p1428_p7)   ;;  %v872_v56 = vld [vmem:[%s2668_s8 + $0x40] sm:$0xff] (!%p1428_p7) }
 0x205   : > { %v867_v14 = vld [vmem:[%s2668_s8 + $0x18] sm:$0xff] (!%p1428_p7) }
 0x206   : > { %833 = vst [vmem:[%s2668_s8 + $0x28] sm:$0xff] %v817_v27  ;;  %841 = vst [vmem:[%s2668_s8 + $0x68] sm:$0xff] %v825_v28  ;;  %v1514_v29 = vpop.f32.mrb[12].mxu0  ;;  %v1538_v30 = vpop.f32.mrb[12].mxu1  ;;  %v875_v5 = vld [vmem:[%s2668_s8 + $0x58] sm:$0xff] (!%p1428_p7) }
 0x207   : > { %v1515_v32 = vpop.f32.mrb[13].mxu0  ;;  %v1539_v34 = vpop.f32.mrb[13].mxu1 }
 0x208   : > { %v1516_v35 = vadd.f32 %v1515_v32, %v1514_v29  ;;  %v1540_v36 = vadd.f32 %v1539_v34, %v1538_v30  ;;  %v1517_v37 = vpop.f32.mrb[14].mxu0  ;;  %v1541_v38 = vpop.f32.mrb[14].mxu1  ;;  %847 = sbr.rel (%p1428_p7) target bundleno = 888 (0x378), region = 68  ;;  %927 = vperm.xlu1 (!%p1428_p7), %1839, %v857_v59   ;;  %922 = vperm.xlu0 (!%p1428_p7), %1838, %v856_v60   ;;  %v1451_v32 = vunpack.c.l.bf16 (!%p1428_p7), %v1474_v22 }
 0x209   : > { %v1518_v40 = vpop.f32.mrb[15].mxu0  ;;  %v1542_v42 = vpop.f32.mrb[15].mxu1 }
 0x20a   : > { %v818_v43 = vadd.f32 %v1516_v35, %v481_v31  ;;  %v826_v44 = vadd.f32 %v1540_v36, %v489_v33  ;;  %v1519_v45 = vadd.f32 %v1518_v40, %v1517_v37  ;;  %v1543_v46 = vadd.f32 %v1542_v42, %v1541_v38  ;;  %v1475_v33 = vld [vmem:[%s2652_s6 + $0x18] sm:$0xff] (!%p1428_p7)  }
 0x20b   : > { %v868_v28 = vld [vmem:[%s2668_s8 + $0x20] sm:$0xff] (!%p1428_p7)  ;;  %v1452_v31 = vunpack.c.h.bf16 (!%p1428_p7), %v1474_v22 }
 0x20c   : > { %834 = vst [vmem:[%s2668_s8 + $0x30] sm:$0xff] %v818_v43  ;;  %842 = vst [vmem:[%s2668_s8 + $0x70] sm:$0xff] %v826_v44  ;;  %v819_v47 = vadd.f32 %v1519_v45, %v482_v39  ;;  %v827_v48 = vadd.f32 %v1543_v46, %v490_v41  ;;  %937 = vperm.xlu1 (!%p1428_p7), %1839, %v859_v61   ;;  %932 = vperm.xlu0 (!%p1428_p7), %1838, %v858_v62   ;;  %v1456_v41 = vunpack.c.h.bf16 (!%p1428_p7), %v1475_v33  ;;  %v1477_v62 = vld [vmem:[%s2652_s6 + $0x28] sm:$0xff] (!%p1428_p7)  }
 0x20d   : > { %v869_v27 = vld [vmem:[%s2668_s8 + $0x28] sm:$0xff] (!%p1428_p7)  ;;  %v1455_v45 = vunpack.c.l.bf16 (!%p1428_p7), %v1475_v33 }
 0x20e   : > { %835 = vst [vmem:[%s2668_s8 + $0x38] sm:$0xff] %v819_v47  ;;  %843 = vst [vmem:[%s2668_s8 + $0x78] sm:$0xff] %v827_v48  ;;  %v1476_v47 = vld [vmem:[%s2652_s6 + $0x20] sm:$0xff] (!%p1428_p7)  }
 0x20f   : > { %v1460_v55 = vunpack.c.h.bf16 %v1476_v47  ;;  %v1459_v60 = vunpack.c.l.bf16 %v1476_v47 }
 0x210   : > { %947 = vperm.xlu1 %1839, %v861_v63   ;;  %942 = vperm.xlu0 %1838, %v860_v0  }
 0x213   : > { %v870_v42 = vld [vmem:[%s2668_s8 + $0x30] sm:$0xff] }
 0x214   : > { %957 = vperm.xlu1 %1839, %v863_v1   ;;  %952 = vperm.xlu0 %1838, %v862_v2  }
 0x215   : > { %v871_v40 = vld [vmem:[%s2668_s8 + $0x38] sm:$0xff] }
 0x216   : > { %v879_v33 = vld [vmem:[%s2668_s8 + $0x78] sm:$0xff] }
 0x277   : > { %v893_v10 = vpop.permute.xlu1 %892  ;;  %v883_v11 = vpop.permute.xlu0 %882 }
 0x278   : > { %v962_v12 = vmul.f32 %v893_v10, %v866_v6  ;;  %v960_v13 = vmul.f32 %v883_v11, %v864_v7  ;;  %v1464_v6 = vunpack.c.h.bf16 %v1477_v62  ;;  %v874_v7 = vld [vmem:[%s2668_s8 + $0x50] sm:$0xff]  ;;  %v1463_v10 = vunpack.c.l.bf16 %v1477_v62 }
 0x27a   : > { %v1010_v16 = vadd.f32 %v1447_v8, %v962_v12  ;;  %v1008_v17 = vadd.f32 %v1443_v9, %v960_v13  ;;  %v1478_v12 = vld [vmem:[%s2652_s6 + $0x30] sm:$0xff]  }
 0x27b   : > { %v898_v20 = vpop.permute.xlu1 %897  ;;  %v888_v21 = vpop.permute.xlu0 %887 }
 0x27c   : > { %v1026_v23 = vmax.f32 %v1010_v16, 0.0  ;;  %v1024_v24 = vmax.f32 %v1008_v17, 0.0  ;;  %v963_v25 = vmul.f32 %v898_v20, %v867_v14  ;;  %v961_v26 = vmul.f32 %v888_v21, %v865_v15  ;;  %v876_v21 = vld [vmem:[%s2668_s8 + $0x60] sm:$0xff] }
 0x27d   : > { %v1468_v20 = vunpack.c.h.bf16 %v1478_v12 }
 0x27e   : > { %1042 = vst [vmem:[%s2668_s8 + $0x10] sm:$0xff] %v1026_v23  ;;  %1040 = vst [vmem:[%s2668_s8] sm:$0xff] %v1024_v24  ;;  %v1011_v29 = vadd.f32 %v1448_v18, %v963_v25  ;;  %v1009_v30 = vadd.f32 %v1444_v19, %v961_v26  ;;  %v877_v19 = vld [vmem:[%s2668_s8 + $0x68] sm:$0xff]  ;;  %v1479_v26 = vld [vmem:[%s2652_s6 + $0x38] sm:$0xff]  }
 0x27f   : > { %v908_v34 = vpop.permute.xlu1 %907  ;;  %v903_v35 = vpop.permute.xlu0 %902 }
 0x280   : > { %v1027_v36 = vmax.f32 %v1011_v29, 0.0  ;;  %v1025_v37 = vmax.f32 %v1009_v30, 0.0  ;;  %v965_v38 = vmul.f32 %v908_v34, %v869_v27  ;;  %v964_v39 = vmul.f32 %v903_v35, %v868_v28  ;;  %v878_v35 = vld [vmem:[%s2668_s8 + $0x70] sm:$0xff] }
 0x281   : > { %v1472_v34 = vunpack.c.h.bf16 %v1479_v26 }
 0x282   : > { %1043 = vst [vmem:[%s2668_s8 + $0x18] sm:$0xff] %v1027_v36  ;;  %1041 = vst [vmem:[%s2668_s8 + $0x8] sm:$0xff] %v1025_v37  ;;  %v1013_v43 = vadd.f32 %v1452_v31, %v965_v38  ;;  %v1012_v44 = vadd.f32 %v1451_v32, %v964_v39  ;;  %v1597_v46 = vpack.c.bf16 %v1025_v37, %v1024_v24  ;;  %v1467_v24 = vunpack.c.l.bf16 %v1478_v12 }
 0x283   : > { %v918_v48 = vpop.permute.xlu1 %917  ;;  %v913_v49 = vpop.permute.xlu0 %912  ;;  %v1600_v61 = vpack.c.bf16 %v1027_v36, %v1026_v23  ;;  %v1471_v38 = vunpack.c.l.bf16 %v1479_v26 }
 0x284   : > { %v1029_v50 = vmax.f32 %v1013_v43, 0.0  ;;  %v1028_v51 = vmax.f32 %v1012_v44, 0.0  ;;  %v967_v52 = vmul.f32 %v918_v48, %v871_v40  ;;  %v966_v53 = vmul.f32 %v913_v49, %v870_v42  ;;  %1598 = vmatpush3.bf16.msra.mxu0 %v1597_v46 }
 0x285   : > { %1599 = vmatprep.subr.bf16.mxu0 %v2194_v58 }
 0x286   : > { %1045 = vst [vmem:[%s2668_s8 + $0x28] sm:$0xff] %v1029_v50  ;;  %1044 = vst [vmem:[%s2668_s8 + $0x20] sm:$0xff] %v1028_v51  ;;  %v1015_v57 = vadd.f32 %v1456_v41, %v967_v52  ;;  %v1014_v59 = vadd.f32 %v1455_v45, %v966_v53  ;;  %v1603_v11 = vpack.c.bf16 %v1029_v50, %v1028_v51  ;;  %v1056_v53 = vld [vmem:[%s2666_s29] sm:$0x3] }
 0x287   : > { %v928_v63 = vpop.permute.xlu1 %927  ;;  %v923_v0 = vpop.permute.xlu0 %922 }
 0x288   : > { %v1031_v1 = vmax.f32 %v1015_v57, 0.0  ;;  %v1030_v2 = vmax.f32 %v1014_v59, 0.0  ;;  %v969_v3 = vmul.f32 %v928_v63, %v873_v54  ;;  %v968_v4 = vmul.f32 %v923_v0, %v872_v56  ;;  %1601 = vmatpush3.bf16.msra.mxu0 %v1600_v61 }
 0x289   : > { %1602 = vmatprep.subr.bf16.mxu0 %v2194_v58 }
 0x28a   : > { %1047 = vst [vmem:[%s2668_s8 + $0x38] sm:$0xff] %v1031_v1  ;;  %1046 = vst [vmem:[%s2668_s8 + $0x30] sm:$0xff] %v1030_v2  ;;  %v1017_v8 = vadd.f32 %v1460_v55, %v969_v3  ;;  %v1016_v9 = vadd.f32 %v1459_v60, %v968_v4  ;;  %v1606_v25 = vpack.c.bf16 %v1031_v1, %v1030_v2 }
 0x28b   : > { %v938_v13 = vpop.permute.xlu1 %937  ;;  %v933_v14 = vpop.permute.xlu0 %932 }
 0x28c   : > { %v1033_v15 = vmax.f32 %v1017_v8, 0.0  ;;  %v1032_v16 = vmax.f32 %v1016_v9, 0.0  ;;  %v971_v17 = vmul.f32 %v938_v13, %v875_v5  ;;  %v970_v18 = vmul.f32 %v933_v14, %v874_v7  ;;  %1604 = vmatpush3.bf16.msra.mxu0 %v1603_v11 }
 0x28d   : > { %1605 = vmatprep.subr.bf16.mxu0 %v2194_v58 }
 0x28e   : > { %1049 = vst [vmem:[%s2668_s8 + $0x48] sm:$0xff] %v1033_v15  ;;  %1048 = vst [vmem:[%s2668_s8 + $0x40] sm:$0xff] %v1032_v16  ;;  %v1019_v22 = vadd.f32 %v1464_v6, %v971_v17  ;;  %v1018_v23 = vadd.f32 %v1463_v10, %v970_v18  ;;  %v1609_v39 = vpack.c.bf16 %v1033_v15, %v1032_v16 }
 0x28f   : > { %v948_v27 = vpop.permute.xlu1 %947  ;;  %v943_v28 = vpop.permute.xlu0 %942 }
 0x290   : > { %v1035_v29 = vmax.f32 %v1019_v22, 0.0  ;;  %v1034_v30 = vmax.f32 %v1018_v23, 0.0  ;;  %v973_v31 = vmul.f32 %v948_v27, %v877_v19  ;;  %v972_v32 = vmul.f32 %v943_v28, %v876_v21  ;;  %1607 = vmatpush3.bf16.msra.mxu0 %v1606_v25 }
 0x291   : > { %1608 = vmatprep.subr.bf16.mxu0 %v2194_v58 }
 0x292   : > { %1051 = vst [vmem:[%s2668_s8 + $0x58] sm:$0xff] %v1035_v29  ;;  %1050 = vst [vmem:[%s2668_s8 + $0x50] sm:$0xff] %v1034_v30  ;;  %v1021_v36 = vadd.f32 %v1468_v20, %v973_v31  ;;  %v1020_v37 = vadd.f32 %v1467_v24, %v972_v32  ;;  %v1612_v48 = vpack.c.bf16 %v1035_v29, %v1034_v30 }
 0x293   : > { %v958_v40 = vpop.permute.xlu1 %957  ;;  %v953_v41 = vpop.permute.xlu0 %952 }
 0x294   : > { %v1037_v42 = vmax.f32 %v1021_v36, 0.0  ;;  %v1036_v43 = vmax.f32 %v1020_v37, 0.0  ;;  %v975_v44 = vmul.f32 %v958_v40, %v879_v33  ;;  %v974_v45 = vmul.f32 %v953_v41, %v878_v35  ;;  %1610 = vmatpush3.bf16.msra.mxu0 %v1609_v39 }
 0x295   : > { %1611 = vmatprep.subr.bf16.mxu0 %v2194_v58 }
 0x296   : > { %1053 = vst [vmem:[%s2668_s8 + $0x68] sm:$0xff] %v1037_v42  ;;  %1052 = vst [vmem:[%s2668_s8 + $0x60] sm:$0xff] %v1036_v43  ;;  %v1023_v46 = vadd.f32 %v1472_v34, %v975_v44  ;;  %v1022_v47 = vadd.f32 %v1471_v38, %v974_v45  ;;  %v1615_v51 = vpack.c.bf16 %v1037_v42, %v1036_v43 }
 0x298   : > { %v1039_v49 = vmax.f32 %v1023_v46, 0.0  ;;  %v1038_v50 = vmax.f32 %v1022_v47, 0.0  ;;  %1613 = vmatpush3.bf16.msra.mxu0 %v1612_v48 }
 0x299   : > { %1614 = vmatprep.subr.bf16.mxu0 %v2194_v58 }
 0x29a   : > { %1055 = vst [vmem:[%s2668_s8 + $0x78] sm:$0xff] %v1039_v49  ;;  %1054 = vst [vmem:[%s2668_s8 + $0x70] sm:$0xff] %v1038_v50  ;;  %v1618_v52 = vpack.c.bf16 %v1039_v49, %v1038_v50 }
 0x29c   : > { %1616 = vmatpush3.bf16.msra.mxu0 %v1615_v51 }
 0x29d   : > { %1617 = vmatprep.subr.bf16.mxu0 %v2194_v58 }
 0x2a0   : > { %1619 = vmatpush3.bf16.msra.mxu0 %v1618_v52 }
 0x2a3   : > { %1594 = vmatmul.mubr.f32.vlgmr.msra.gmra.mrb[0].mxu0 %v1056_v53 }
 0x376   : > { %v1123_v54 = vpop.f32.mrb[0].mxu0 }
 0x377   : > { %1127 = vst [vmem:[%s2670_s19] sm:$0x3] %v1123_v54  ;;  %v1595_v55 = vpop.f32.mrb[1].mxu0 }
 0x378 PF: > { %s3029_s7 = sld [smem:[#allocation26_spill]]  ;;  %s3030_s5 = sld [smem:[#allocation33_spill]] }
 0x379   : > { %s3031_s26 = sld [smem:[#allocation38_spill]]  ;;  %s1147_s14 = sshll.u32 %s2668_s8, 4  ;;  %s2827_s14 = int_to_ptr.vmem [resolvable:$true] %s1147_s14 }
 0x37a   : > { %s1129_s3 = scalar_lea.sflag [#allocation4], %s2649_s15  ;;  %s1991_s22 = scalar_lea.vmem %s2827_s14, 2048 }
 0x37b   : > { %p1992_p2 = scmp.ne.s32.totalorder %s2827_s14, %s1991_s22  ;;  %s2197_s23 = smov [#allocation11]  }
 0x37c   : > { %s1995_s21 = sshll.u32 %s2197_s23, 4  ;;  %s1996_s21 = int_to_ptr.vmem [resolvable:$false] %s1995_s21 }
 0x37d   : > { %s1997_s6 = scalar_lea.vmem %s1996_s21, 4096  ;;  %p1998_p9 = scmp.lt.s32.totalorder %s2827_s14, %s1996_s21 }
 0x37e   : > { %s1440_s12 = sshll.u32 %s3029_s7, 11  ;;  %p3033_p11 = scmp.ne.s32.totalorder %s3030_s5, 0 }
 0x37f   : > { %s3032_s17 = smov %s3031_s26  ;;  %s2824_s18 = scalar_lea.hbm %s3031_s26, %s1440_s12 }
 0x380   : > { %p1993_p12 = pnand %p1992_p2, %p3033_p11  ;;  %p1999_p1 = scmp.lt.s32.totalorder %s1997_s6, %s1991_s22 }
 0x382   : > { %p1994_p13 = pneg %p1993_p12  ;;  %p2000_p5 = por %p1999_p1, %p1998_p9 }
 0x384   : > { %p2001_p8 = pnand %p2000_p5, %p1994_p13 }
 0x386   : > { %2004 = shalt.err (!%p2001_p8)
}
 0x387   : > { %s2005_s11 = scalar_lea.hbm %s2824_s18, 2048  ;;  %s2009_s20 = scalar_lea.hbm %s3032_s17, 4096 }
 0x388   : > { %p2006_p0 = scmp.ne.s32.totalorder %s2824_s18, %s2005_s11  ;;  %p2010_p6 = scmp.lt.u32.totalorder %s2824_s18, %s3032_s17 }
 0x389   : > { %p2011_p10 = scmp.lt.u32.totalorder %s2009_s20, %s2005_s11  ;;  %p2013_p2 = scmp.lt.u32.totalorder %s2005_s11, %s2824_s18 }
 0x38a   : > { %p2007_p3 = pnand %p2006_p0, %p3033_p11 }
 0x38b   : > { %p2012_p7 = por %p2011_p10, %p2010_p6 }
 0x38c   : > { %p2008_p4 = pneg %p2007_p3 }
 0x38d   : > { %p2014_p12 = por %p2013_p2, %p2012_p7 }
 0x38f   : > { %p2015_p13 = pnand %p2014_p12, %p2008_p4 }
 0x391   : > { %2018 = shalt.err (!%p2015_p13)
}
 0x392   : > { %s2198_s1 = smov 128   ;;  %s2199_s16 = smov 8  }
 0x393   : > { %1646 = dma.vmem_to_hbm [thread:$0]  (%p3033_p11), %s2827_s14, 2048, %s2824_s18, %s1129_s3, %s2198_s1, %s2198_s1, %s2199_s16  }
 0x394   : > { %s1433_s12 = sshll.u32 %s3029_s7, 5  ;;  %s1163_s13 = sshll.u32 %s2670_s19, 4  ;;  %s1164_s13 = int_to_ptr.vmem [resolvable:$true] %s1163_s13 }
 0x395   : > { %s3034_s22 = sld [smem:[#allocation39_spill]]  ;;  %s1134_s21 = scalar_lea.sflag [#allocation13], %s2649_s15 }
 0x396   : > { %s2019_s11 = scalar_lea.vmem %s1164_s13, 32  ;;  %s2200_s24 = smov [#allocation12]  }
 0x397   : > { %p2020_p9 = scmp.ne.s32.totalorder %s1164_s13, %s2019_s11  ;;  %s2023_s27 = sshll.u32 %s2200_s24, 4  ;;  %s2024_s27 = int_to_ptr.vmem [resolvable:$false] %s2023_s27 }
 0x398   : > { %s2025_s20 = scalar_lea.vmem %s2024_s27, 64  ;;  %p2026_p8 = scmp.lt.s32.totalorder %s1164_s13, %s2024_s27 }
 0x399   : > { %p2021_p1 = pnand %p2020_p9, %p3033_p11  ;;  %p2027_p0 = scmp.lt.s32.totalorder %s2025_s20, %s2019_s11 }
 0x39b   : > { %s3035_s6 = smov %s3034_s22  ;;  %s2858_s23 = scalar_lea.hbm %s3034_s22, %s1433_s12 }
 0x39c   : > { %p2022_p5 = pneg %p2021_p1  ;;  %p2028_p3 = por %p2027_p0, %p2026_p8 }
 0x39e   : > { %p2029_p4 = pnand %p2028_p3, %p2022_p5 }
 0x3a0   : > { %2032 = shalt.err (!%p2029_p4)
}
 0x3a1   : > { %s2033_s15 = scalar_lea.hbm %s2858_s23, 32  ;;  %s2037_s18 = scalar_lea.hbm %s3035_s6, 64 }
 0x3a2   : > { %p2034_p6 = scmp.ne.s32.totalorder %s2858_s23, %s2033_s15  ;;  %p2038_p2 = scmp.lt.u32.totalorder %s2858_s23, %s3035_s6 }
 0x3a3   : > { %p2039_p12 = scmp.lt.u32.totalorder %s2037_s18, %s2033_s15  ;;  %p2041_p9 = scmp.lt.u32.totalorder %s2033_s15, %s2858_s23 }
 0x3a4   : > { %p2035_p10 = pnand %p2034_p6, %p3033_p11 }
 0x3a5   : > { %p2040_p13 = por %p2039_p12, %p2038_p2 }
 0x3a6   : > { %p2036_p7 = pneg %p2035_p10 }
 0x3a7   : > { %p2042_p1 = por %p2041_p9, %p2040_p13 }
 0x3a9   : > { %p2043_p5 = pnand %p2042_p1, %p2036_p7 }
 0x3ab   : > { %2046 = shalt.err (!%p2043_p5)
}
 0x3ac   : > { %1647 = dma.vmem_to_hbm [thread:$0]  (%p3033_p11), %s1164_s13, 32, %s2858_s23, %s1134_s21  }
 0x3ad PF: > { %s3036_s29 = sld [smem:[#allocation20_spill]]  ;;  %s3037_s8 = sld [smem:[#allocation34_spill]] }
 0x3ae   : > { %p1674_p8 = scmp.ge.s32.totalorder %s2181_s10, 2 }
 0x3b3   : > { %s1175_s1 = sand.u32 1, %s3036_s29   ;;  %p3038_p0 = scmp.ne.s32.totalorder %s3037_s8, 0 }
 0x3b4   : > { %s1176_s16 = scalar_lea.sflag [#allocation4], %s1175_s1 }
 0x3b5   : > { %p1667_p3 = pnand %p1674_p8, %p3038_p0 }
 0x3b7   : > { %2120 = dma.done.wait (!%p1667_p3), %s1176_s16, 2048  }
 0x3b8   : > { %2122 = vsyncadd (!%p1667_p3), %s1176_s16, 4294965248  ;;  %s1185_s12 = scalar_lea.sflag [#allocation13], %s1175_s1 }
 0x3b9   : > { %2124 = dma.done.wait (!%p1667_p3), %s1185_s12, 32  }
 0x3ba   : > { %2126 = vsyncadd (!%p1667_p3), %s1185_s12, 4294967264  ;;  %s32_s10 = sadd.s32 1, %s2181_s10   ;;  %s3040_s21 = sld [smem:[#allocation21_spill]] }
 0x3bb   : > { %p2883_p4 = scmp.ge.s32.totalorder %s32_s10, 10   ;;  %s3041_s22 = sld [smem:[#allocation22_spill]] }
 0x3bc   : > { %s3042_s23 = sld [smem:[#allocation31_spill]]  ;;  %s3043_s13 = sld [smem:[#allocation23_spill]] }
 0x3bd   : > { %s3044_s26 = sld [smem:[#allocation30_spill]]  ;;  %s3045_s30 = sld [smem:[#allocation24_spill]] }
 0x3be   : > { %s3046_s29 = sld [smem:[#allocation35_spill]]  ;;  %s3047_s11 = sld [smem:[#allocation27_spill]] }
 0x3bf   : > { %s3048_s8 = sld [smem:[#allocation28_spill]]  ;;  %s3049_s20 = sld [smem:[#allocation29_spill]] }
 0x3c0   : > { %s3050_s24 = smov %s2145_s25  ;;  %s3052_s27 = smov %s2157_s28 }
 0x3c1   : > { %s3055_s7 = smov %s2177_s9  ;;  %31 = sbr.rel (!%p2883_p4) target bundleno = 21 (0x15), region = 158 }
 0x3c2   : > { %s3051_s25 = smov %s3043_s13 }
 0x3c3   : > { %s3053_s28 = smov %s3045_s30 }
 0x3c4   : > { %s3054_s30 = smov %s3047_s11 }
 0x3c5   : > { %s3056_s9 = smov %s3049_s20 }
 0x3c8   :  { %1190 = vsyncpa [#allocation3], 1 }
 0x3c9   :  { %1192 = vsyncpa [#allocation3 + $0x1], 1 }
 0x3ca   :  { %1193 = vsyncpa [#allocation6], 1 }
 0x3cb   :  { %1195 = vsyncpa [#allocation6 + $0x1], 1 }
 0x3cc   :  { %1196 = vsyncpa [#allocation9], 1 }
 0x3cd   :  { %1198 = vsyncpa [#allocation9 + $0x1], 1 }
 0x3ce   :  { %1199 = vsyncpa [#allocation4], 1 }
 0x3cf   :  { %1201 = vsyncpa [#allocation4 + $0x1], 1 }
 0x3d0   :  { %1202 = vsyncpa [#allocation13], 1 }
 0x3d1   :  { %1204 = vsyncpa [#allocation13 + $0x1], 1 }

</bundles_post_ra>
